<compile_context>
chip_gen: v6e
topology: v6e:2x2x1
jax: 0.10.0
libtpu: 0.0.40
codegen_flags: <defaults>
</compile_context>

<pallas_src>
import functools
import numpy as np
import jax
import jax.numpy as jnp
from jax.experimental import pallas as pl
from jax.experimental.pallas import tpu as pltpu

_LOG4 = float(np.log(4.0))
_LANE = 128


# ----------------------------------------------------------------------------
# define_ppn12 — unchanged helper (pure python / numpy)
# ----------------------------------------------------------------------------
def define_ppn12(ppn1_size, ppn2_size, spatial_size, num_strides):
    if ppn1_size == -1:
        ppn1_size = spatial_size / 2 ** 4
    if ppn2_size == -1:
        ppn2_size = spatial_size / 2 ** 2
    assert 0 <= ppn1_size <= spatial_size
    assert 0 <= ppn2_size <= spatial_size
    assert spatial_size % ppn1_size == 0
    assert spatial_size % ppn2_size == 0
    assert ppn1_size < ppn2_size
    ppn2_stride = int(np.log2(spatial_size / ppn2_size))
    ppn1_stride = int(np.log2(spatial_size / ppn1_size))
    assert ppn1_stride < num_strides
    return ppn1_stride, ppn2_stride


# ----------------------------------------------------------------------------
# Small host-side helpers (layout plumbing only)
# ----------------------------------------------------------------------------
def _round_up(x, m):
    return ((x + m - 1) // m) * m


def _flatten_w(w, cin_p, cout_p=None):
    """(3,3,Cin,Cout) -> (Cout_p, 9*Cin_p), channel-padded with zeros, so that
    column (ky*3+kx)*Cin_p + cin holds w[ky, kx, cin, :]."""
    _, _, cin, cout = w.shape
    wp = jnp.pad(w, ((0, 0), (0, 0), (0, cin_p - cin), (0, 0)))
    wf = jnp.transpose(wp.reshape(9 * cin_p, cout))            # (Cout, 9*Cin_p)
    if cout_p is not None and cout_p > cout:
        wf = jnp.pad(wf, ((0, cout_p - cout), (0, 0)))
    return wf.astype(jnp.float32)


def _upsample_matrix(s_src, s_dst, n_src, n_dst):
    """Constant 0/1 matrix implementing nearest-neighbor unpool between two
    lane-padded padded-flat layouts: (1, n_src) @ U -> (1, n_dst)."""
    f = s_dst // s_src
    wps, wpd = s_src + 2, s_dst + 2
    u = np.zeros((n_src, n_dst), np.float32)
    for yd in range(s_dst):
        for xd in range(s_dst):
            u[(yd // f + 1) * wps + (xd // f + 1), (yd + 1) * wpd + (xd + 1)] = 1.0
    return u


def _interior_mask(s, n_pad):
    """(1, n_pad) float mask: 1 on the image interior, 0 on the 1-px padding
    ring and on the lane-padding tail."""
    wp = s + 2
    m = np.zeros((wp, wp), np.float32)
    m[1:-1, 1:-1] = 1.0
    flat = m.reshape(1, wp * wp)
    return np.pad(flat, ((0, 0), (0, n_pad - wp * wp)))


def _prep(fm_nchw, c_pad, n_pad):
    """NCHW -> channel-padded, spatially zero-padded, flattened and lane-padded
    (B, Cp, n_pad)."""
    b, c, h, w = fm_nchw.shape
    x = jnp.pad(fm_nchw.astype(jnp.float32),
                ((0, 0), (0, c_pad - c), (1, 1), (1, 1)))
    x = x.reshape(b, c_pad, (h + 2) * (w + 2))
    return jnp.pad(x, ((0, 0), (0, 0), (0, n_pad - (h + 2) * (w + 2))))


def _to_features(x_cpf, s):
    """(B, C, n_pad) padded-flat -> sparse-style features (B*s*s, C) in
    row-major (b, y, x) site order."""
    b, c, _ = x_cpf.shape
    wp = s + 2
    x = x_cpf[:, :, :wp * wp].reshape(b, c, wp, wp)[:, :, 1:-1, 1:-1]
    return jnp.transpose(x, (0, 2, 3, 1)).reshape(b * s * s, c)


def make_coords(B, H, W):
    """Dense equivalent of scn get_spatial_locations(): (y, x, batch) per site."""
    b, y, x = jnp.meshgrid(jnp.arange(B), jnp.arange(H), jnp.arange(W), indexing="ij")
    return jnp.stack([y, x, b], axis=-1).reshape(-1, 3).astype(jnp.float32)


# ----------------------------------------------------------------------------
# Fused Pallas kernel (whole PPN forward for one batch element per grid step)
# ----------------------------------------------------------------------------
def _build_ppn_kernel(num_conv, WP1, WP2, WP3):
    def zero_margins(xsc, m):
        # Explicitly zero the staging-scratch margins so no uninitialized VMEM
        # ever enters the im2col patch (tiny masked stores, done once per step).
        w = xsc.shape[1]
        xsc[:, :m] = jnp.zeros_like(xsc[:, :m])
        xsc[:, w - m:] = jnp.zeros_like(xsc[:, w - m:])

    def conv3x3(x, w_flat, xsc, psc, WP, interior):
        # x: (Cin_p, N) padded-flat value with a zero ring (+ zero lane-tail).
        # xsc: VMEM (Cin_p, N + 2*(WP+1)) staging scratch (extra margin so every
        #      tap is a plain static slice, no wrap-around / roll needed).
        # psc: VMEM (9*Cin_p, N) im2col patch scratch.
        # Returns (Cout, N) with ring + lane-tail forced to exact zero.
        cin_p, n = x.shape
        m = WP + 1
        xsc[:, m:m + n] = x
        i = 0
        for ky in range(3):
            for kx in range(3):
                t = (ky - 1) * WP + (kx - 1)
                psc[i * cin_p:(i + 1) * cin_p, :] = xsc[:, m + t:m + t + n]
                i += 1
        out = jnp.dot(w_flat, psc[...], preferred_element_type=jnp.float32)
        return jnp.where(interior, out, 0.0)

    def select(scores):
        # softmax(scores)[1] > 0.8  <=>  s1 - s0 > log(4)   (exact equivalence)
        return jnp.where(scores[1:2, :] - scores[0:1, :] > _LOG4, 1.0, 0.0)

    def kernel(*refs):
        it = iter(refs)
        fm1 = next(it)[...]
        fm2 = next(it)[...]
        fm3 = next(it)[...]
        w1c = [next(it)[...] for _ in range(num_conv)]
        w1s = next(it)[...]
        w2c = [next(it)[...] for _ in range(num_conv)]
        w2s = next(it)[...]
        w3c = [next(it)[...] for _ in range(num_conv)]
        w3h = next(it)[...]
        u1 = next(it)[...]
        u2 = next(it)[...]
        im1 = next(it)[...] != 0.0
        im2 = next(it)[...] != 0.0
        im3 = next(it)[...] != 0.0
        o_s1 = next(it)
        o_s2 = next(it)
        o_heads = next(it)
        o_att1 = next(it)
        o_att2 = next(it)
        xsc1 = next(it)
        psc1 = next(it)
        xsc2 = next(it)
        psc2 = next(it)
        xsc3 = next(it)
        psc3 = next(it)

        zero_margins(xsc1, WP1 + 1)
        zero_margins(xsc2, WP2 + 1)
        zero_margins(xsc3, WP3 + 1)

        # ---- PPN1 branch (coarsest feature map) ------------------------------
        x = fm1
        for w in w1c:
            x = conv3x3(x, w, xsc1, psc1, WP1, im1)
        s1 = conv3x3(x, w1s, xsc1, psc1, WP1, im1)              # (2, N1)
        o_s1[...] = s1
        # selection + unpool fused: binary mask -> matmul with constant 0/1
        # upsample matrix gives the attention map at PPN2 resolution.
        att1 = jnp.dot(select(s1), u1, preferred_element_type=jnp.float32)
        o_att1[...] = att1                                      # (1, N2)

        # ---- PPN2 branch ------------------------------------------------------
        y = fm2 * att1                                          # Multiply() fused
        for w in w2c:
            y = conv3x3(y, w, xsc2, psc2, WP2, im2)
        s2 = conv3x3(y, w2s, xsc2, psc2, WP2, im2)              # (2, N2)
        o_s2[...] = s2
        att2 = jnp.dot(select(s2), u2, preferred_element_type=jnp.float32)
        o_att2[...] = att2                                      # (1, N3)

        # ---- PPN3 branch (full resolution, three heads in one conv) ----------
        z = fm3 * att2
        for w in w3c:
            z = conv3x3(z, w, xsc3, psc3, WP3, im3)
        o_heads[...] = conv3x3(z, w3h, xsc3, psc3, WP3, im3)    # (dim+2+ncls, N3)

    return kernel


# ----------------------------------------------------------------------------
# PPN forward (eval mode: no labels, no ghost masking)
# ----------------------------------------------------------------------------
class PPNPallas:
    def __init__(self, key, *, dim=2, num_strides=3, filters=4, num_classes=5,
                 spatial_size=16, ppn1_size=4, ppn2_size=8, ppn_num_conv=1):
        self.dim = dim
        self.num_strides = num_strides
        self.m = filters
        self.num_classes = num_classes
        self.spatial_size = spatial_size
        self.ppn_num_conv = ppn_num_conv
        self.ppn1_stride, self.ppn2_stride = define_ppn12(
            ppn1_size, ppn2_size, spatial_size, num_strides)

        nPlanes = [i * filters for i in range(1, num_strides + 1)]
        self.C1 = nPlanes[self.ppn1_stride - num_strides]       # == nPlanes[ppn1_stride]
        self.C2 = (self.ppn2_stride + 1) * filters               # middle_filters
        self.C3 = nPlanes[0]
        self.S = spatial_size
        self.S1 = spatial_size // 2 ** self.ppn1_stride
        self.S2 = spatial_size // 2 ** self.ppn2_stride
        self.n_heads = dim + 2 + num_classes

        # Lane-padded flat spatial sizes (multiples of 128 -> lane-dense stores
        # and fully-filled MXU N dims).
        self.N1 = _round_up((self.S1 + 2) ** 2, _LANE)
        self.N2 = _round_up((self.S2 + 2) ** 2, _LANE)
        self.N3 = _round_up((self.S + 2) ** 2, _LANE)

        # Deterministic weight init (SubmanifoldConvolution: 3x3, no bias).
        def winit(k, cin, cout):
            return (jax.random.normal(k, (3, 3, cin, cout), jnp.float32)
                    * (1.0 / np.sqrt(9.0 * cin)))

        keys = iter(jax.random.split(key, 3 * ppn_num_conv + 5))
        self.w_ppn1_conv = [winit(next(keys), self.C1, self.C1) for _ in range(ppn_num_conv)]
        self.w_ppn1_scores = winit(next(keys), self.C1, 2)
        self.w_ppn2_conv = [winit(next(keys), self.C2, self.C2) for _ in range(ppn_num_conv)]
        self.w_ppn2_scores = winit(next(keys), self.C2, 2)
        self.w_ppn3_conv = [winit(next(keys), self.C3, self.C3) for _ in range(ppn_num_conv)]
        self.w_ppn3_pixel = winit(next(keys), self.C3, dim)
        self.w_ppn3_scores = winit(next(keys), self.C3, 2)
        self.w_ppn3_type = winit(next(keys), self.C3, num_classes)

        # Kernel-ready, channel-padded flat weights / constants.
        self.C1p = _round_up(self.C1, 8)
        self.C2p = _round_up(self.C2, 8)
        self.C3p = _round_up(self.C3, 8)
        self.w1c_flat = [_flatten_w(w, self.C1p, self.C1p) for w in self.w_ppn1_conv]
        self.w1s_flat = _flatten_w(self.w_ppn1_scores, self.C1p)
        self.w2c_flat = [_flatten_w(w, self.C2p, self.C2p) for w in self.w_ppn2_conv]
        self.w2s_flat = _flatten_w(self.w_ppn2_scores, self.C2p)
        self.w3c_flat = [_flatten_w(w, self.C3p, self.C3p) for w in self.w_ppn3_conv]
        w_heads = jnp.concatenate(
            [self.w_ppn3_pixel, self.w_ppn3_scores, self.w_ppn3_type], axis=3)
        self.w3h_flat = _flatten_w(w_heads, self.C3p)            # (dim+2+ncls, 9*C3p)

        self.U1 = jnp.asarray(_upsample_matrix(self.S1, self.S2, self.N1, self.N2))
        self.U2 = jnp.asarray(_upsample_matrix(self.S2, self.S, self.N2, self.N3))
        self.im1 = jnp.asarray(_interior_mask(self.S1, self.N1))
        self.im2 = jnp.asarray(_interior_mask(self.S2, self.N2))
        self.im3 = jnp.asarray(_interior_mask(self.S, self.N3))

        self._kernel = _build_ppn_kernel(
            ppn_num_conv, self.S1 + 2, self.S2 + 2, self.S + 2)

        # TODO(synk): sparse-only ops (GhostMask, AddLabels training branch, true
        # SCN metadata / active-site bookkeeping) have no dense Pallas equivalent
        # and are intentionally omitted (eval mode, downsample_ghost=False).

    @functools.partial(jax.jit, static_argnums=0)
    def forward(self, feature_map1, feature_map2, feature_map3):
        """feature_map{1,2,3}: NCHW dense tensors at strides ppn1/ppn2/0."""
        B = feature_map1.shape[0]
        N1, N2, N3 = self.N1, self.N2, self.N3

        fm1 = _prep(feature_map1, self.C1p, N1)
        fm2 = _prep(feature_map2, self.C2p, N2)
        fm3 = _prep(feature_map3, self.C3p, N3)

        weight_args = (list(self.w1c_flat) + [self.w1s_flat]
                       + list(self.w2c_flat) + [self.w2s_flat]
                       + list(self.w3c_flat) + [self.w3h_flat]
                       + [self.U1, self.U2, self.im1, self.im2, self.im3])

        def batched(c, n):
            return pl.BlockSpec((None, c, n), lambda b: (b, 0, 0))

        in_specs = ([batched(self.C1p, N1), batched(self.C2p, N2), batched(self.C3p, N3)]
                    + [pl.BlockSpec(a.shape, lambda b: (0, 0)) for a in weight_args])

        out_shape = (
            jax.ShapeDtypeStruct((B, 2, N1), jnp.float32),           # ppn1 scores
            jax.ShapeDtypeStruct((B, 2, N2), jnp.float32),           # ppn2 scores
            jax.ShapeDtypeStruct((B, self.n_heads, N3), jnp.float32),  # pixel|scores|type
            jax.ShapeDtypeStruct((B, 1, N2), jnp.float32),           # attention (mask_ppn1)
            jax.ShapeDtypeStruct((B, 1, N3), jnp.float32),           # attention2 (mask_ppn2)
        )
        out_specs = (batched(2, N1), batched(2, N2), batched(self.n_heads, N3),
                     batched(1, N2), batched(1, N3))

        m1, m2, m3 = self.S1 + 3, self.S2 + 3, self.S + 3           # WP + 1 margins
        scratch_shapes = [
            pltpu.VMEM((self.C1p, N1 + 2 * m1), jnp.float32),
            pltpu.VMEM((9 * self.C1p, N1), jnp.float32),
            pltpu.VMEM((self.C2p, N2 + 2 * m2), jnp.float32),
            pltpu.VMEM((9 * self.C2p, N2), jnp.float32),
            pltpu.VMEM((self.C3p, N3 + 2 * m3), jnp.float32),
            pltpu.VMEM((9 * self.C3p, N3), jnp.float32),
        ]

        s1, s2, heads, att1, att2 = pl.pallas_call(
            self._kernel,
            out_shape=out_shape,
            grid=(B,),
            in_specs=in_specs,
            out_specs=out_specs,
            scratch_shapes=scratch_shapes,
            compiler_params=pltpu.CompilerParams(
                dimension_semantics=("parallel",)),
        )(fm1, fm2, fm3, *weight_args)

        # --- result assembly (XLA-side layout plumbing only) ------------------
        coords1 = make_coords(B, self.S1, self.S1)
        coords2 = make_coords(B, self.S2, self.S2)
        return {
            "points": [_to_features(heads, self.S)],
            "ppn1": [jnp.concatenate([coords1, _to_features(s1, self.S1)], axis=1)],
            "ppn2": [jnp.concatenate([coords2, _to_features(s2, self.S2)], axis=1)],
            "mask_ppn1": [_to_features(att1, self.S2)],
            "mask_ppn2": [_to_features(att2, self.S)],
        }


# ----------------------------------------------------------------------------
# Pure-jnp reference of the same dense forward (validation only)
# ----------------------------------------------------------------------------
def _reference_forward(model, f1, f2, f3):
    def conv(x, w):
        h, wd = x.shape[1], x.shape[2]
        xp = jnp.pad(x, ((0, 0), (1, 1), (1, 1), (0, 0)))
        out = jnp.zeros(x.shape[:3] + (w.shape[-1],), jnp.float32)
        for ky in range(3):
            for kx in range(3):
                out = out + jnp.einsum("bhwc,co->bhwo",
                                       xp[:, ky:ky + h, kx:kx + wd, :], w[ky, kx])
        return out

    def select(s):
        return (jax.nn.softmax(s, axis=-1)[..., 1:2] > 0.8).astype(jnp.float32)

    def unpool(m, f):
        return jnp.repeat(jnp.repeat(m, f, axis=1), f, axis=2) if f > 1 else m

    fm1 = jnp.transpose(f1, (0, 2, 3, 1)).astype(jnp.float32)
    fm2 = jnp.transpose(f2, (0, 2, 3, 1)).astype(jnp.float32)
    fm3 = jnp.transpose(f3, (0, 2, 3, 1)).astype(jnp.float32)

    x = fm1
    for w in model.w_ppn1_conv:
        x = conv(x, w)
    s1 = conv(x, model.w_ppn1_scores)
    att1 = unpool(select(s1), 2 ** (model.ppn1_stride - model.ppn2_stride))
    y = fm2 * att1
    for w in model.w_ppn2_conv:
        y = conv(y, w)
    s2 = conv(y, model.w_ppn2_scores)
    att2 = unpool(select(s2), 2 ** model.ppn2_stride)
    z = fm3 * att2
    for w in model.w_ppn3_conv:
        z = conv(z, w)
    pix = conv(z, model.w_ppn3_pixel)
    sc3 = conv(z, model.w_ppn3_scores)
    ty3 = conv(z, model.w_ppn3_type)

    B, S1sz, S2sz = s1.shape[0], s1.shape[1], s2.shape[1]
    points = jnp.concatenate([pix.reshape(-1, model.dim),
                              sc3.reshape(-1, 2),
                              ty3.reshape(-1, model.num_classes)], axis=1)
    return {
        "points": [points],
        "ppn1": [jnp.concatenate([make_coords(B, S1sz, S1sz), s1.reshape(-1, 2)], axis=1)],
        "ppn2": [jnp.concatenate([make_coords(B, S2sz, S2sz), s2.reshape(-1, 2)], axis=1)],
        "mask_ppn1": [att1.reshape(-1, 1)],
        "mask_ppn2": [att2.reshape(-1, 1)],
    }


# ----------------------------------------------------------------------------
if __name__ == "__main__":
    key = jax.random.PRNGKey(0)
    k_w, k1, k2, k3 = jax.random.split(key, 4)

    model = PPNPallas(k_w, dim=2, num_strides=3, filters=4, num_classes=5,
                      spatial_size=16, ppn1_size=4, ppn2_size=8, ppn_num_conv=1)

    B = 2
    S, S1, S2 = model.S, model.S1, model.S2   # 16, 4, 8

    # Decoder feature maps the PPN consumes (NCHW dense stand-ins for the
    # sparse UResNet outputs).
    feature_map1 = jax.random.normal(k1, (B, model.C1, S1, S1), jnp.float32)
    feature_map2 = jax.random.normal(k2, (B, model.C2, S2, S2), jnp.float32)
    feature_map3 = jax.random.normal(k3, (B, model.C3, S, S), jnp.float32)

    out = model.forward(feature_map1, feature_map2, feature_map3)
    jax.block_until_ready(out)

    # Validate against a pure-jnp reference of the same dense semantics.
    ref = _reference_forward(model, feature_map1, feature_map2, feature_map3)
    for k in ("points", "ppn1", "ppn2", "mask_ppn1", "mask_ppn2"):
        np.testing.assert_allclose(np.asarray(out[k][0]), np.asarray(ref[k][0]),
                                   rtol=1e-4, atol=1e-4)

    assert out["points"][0].shape == (B * S * S, model.dim + 2 + model.num_classes)
    assert out["ppn1"][0].shape == (B * S1 * S1, 3 + 2)
    assert out["ppn2"][0].shape == (B * S2 * S2, 3 + 2)
    assert out["mask_ppn1"][0].shape == (B * S2 * S2, 1)
    assert out["mask_ppn2"][0].shape == (B * S * S, 1)
    print("KERNEL_OK")
</pallas_src>

<mosaic_0001>
module attributes {stable_mosaic.version = 11 : i64} {
  func.func @kernel(%arg0: i32, %arg1: memref<1x16x128xf32, #tpu.memory_space<vmem>>, %arg2: memref<1x8x128xf32, #tpu.memory_space<vmem>>, %arg3: memref<1x8x384xf32, #tpu.memory_space<vmem>>, %arg4: memref<16x144xf32, #tpu.memory_space<vmem>>, %arg5: memref<2x144xf32, #tpu.memory_space<vmem>>, %arg6: memref<8x72xf32, #tpu.memory_space<vmem>>, %arg7: memref<2x72xf32, #tpu.memory_space<vmem>>, %arg8: memref<8x72xf32, #tpu.memory_space<vmem>>, %arg9: memref<9x72xf32, #tpu.memory_space<vmem>>, %arg10: memref<128x128xf32, #tpu.memory_space<vmem>>, %arg11: memref<128x384xf32, #tpu.memory_space<vmem>>, %arg12: memref<1x128xf32, #tpu.memory_space<vmem>>, %arg13: memref<1x128xf32, #tpu.memory_space<vmem>>, %arg14: memref<1x384xf32, #tpu.memory_space<vmem>>, %arg15: memref<1x2x128xf32, #tpu.memory_space<vmem>>, %arg16: memref<1x2x128xf32, #tpu.memory_space<vmem>>, %arg17: memref<1x9x384xf32, #tpu.memory_space<vmem>>, %arg18: memref<1x1x128xf32, #tpu.memory_space<vmem>>, %arg19: memref<1x1x384xf32, #tpu.memory_space<vmem>>, %arg20: memref<16x142xf32, #tpu.memory_space<vmem>>, %arg21: memref<144x128xf32, #tpu.memory_space<vmem>>, %arg22: memref<8x150xf32, #tpu.memory_space<vmem>>, %arg23: memref<72x128xf32, #tpu.memory_space<vmem>>, %arg24: memref<8x422xf32, #tpu.memory_space<vmem>>, %arg25: memref<72x384xf32, #tpu.memory_space<vmem>>) attributes {dimension_semantics = [#tpu.dimension_semantics<parallel>], iteration_bounds = array<i64: 2>, scalar_prefetch = 0 : i64, scratch_operands = 6 : i64, tpu.core_type = #tpu.core_type<tc>, window_params = [{transform_indices = @transform_0, window_bounds = array<i64: 1, 16, 128>}, {transform_indices = @transform_1, window_bounds = array<i64: 1, 8, 128>}, {transform_indices = @transform_2, window_bounds = array<i64: 1, 8, 384>}, {pipeline_mode = #tpu.pipeline_mode<synchronous>, transform_indices = @transform_3, window_bounds = array<i64: 16, 144>}, {pipeline_mode = #tpu.pipeline_mode<synchronous>, transform_indices = @transform_4, window_bounds = array<i64: 2, 144>}, {pipeline_mode = #tpu.pipeline_mode<synchronous>, transform_indices = @transform_5, window_bounds = array<i64: 8, 72>}, {pipeline_mode = #tpu.pipeline_mode<synchronous>, transform_indices = @transform_6, window_bounds = array<i64: 2, 72>}, {pipeline_mode = #tpu.pipeline_mode<synchronous>, transform_indices = @transform_7, window_bounds = array<i64: 8, 72>}, {pipeline_mode = #tpu.pipeline_mode<synchronous>, transform_indices = @transform_8, window_bounds = array<i64: 9, 72>}, {pipeline_mode = #tpu.pipeline_mode<synchronous>, transform_indices = @transform_9, window_bounds = array<i64: 128, 128>}, {pipeline_mode = #tpu.pipeline_mode<synchronous>, transform_indices = @transform_10, window_bounds = array<i64: 128, 384>}, {pipeline_mode = #tpu.pipeline_mode<synchronous>, transform_indices = @transform_11, window_bounds = array<i64: 1, 128>}, {pipeline_mode = #tpu.pipeline_mode<synchronous>, transform_indices = @transform_12, window_bounds = array<i64: 1, 128>}, {pipeline_mode = #tpu.pipeline_mode<synchronous>, transform_indices = @transform_13, window_bounds = array<i64: 1, 384>}, {transform_indices = @transform_14, window_bounds = array<i64: 1, 2, 128>}, {transform_indices = @transform_15, window_bounds = array<i64: 1, 2, 128>}, {transform_indices = @transform_16, window_bounds = array<i64: 1, 9, 384>}, {transform_indices = @transform_17, window_bounds = array<i64: 1, 1, 128>}, {transform_indices = @transform_18, window_bounds = array<i64: 1, 1, 384>}]} {
    %c0 = arith.constant 0 : index
    %c0_0 = arith.constant 0 : index
    %c0_1 = arith.constant 0 : index
    %0 = vector.load %arg1[%c0, %c0_0, %c0_1] : memref<1x16x128xf32, #tpu.memory_space<vmem>>, vector<1x16x128xf32>
    %1 = vector.shape_cast %0 : vector<1x16x128xf32> to vector<16x128xf32>
    %c0_2 = arith.constant 0 : index
    %c0_3 = arith.constant 0 : index
    %c0_4 = arith.constant 0 : index
    %2 = vector.load %arg2[%c0_2, %c0_3, %c0_4] : memref<1x8x128xf32, #tpu.memory_space<vmem>>, vector<1x8x128xf32>
    %3 = vector.shape_cast %2 : vector<1x8x128xf32> to vector<8x128xf32>
    %c0_5 = arith.constant 0 : index
    %c0_6 = arith.constant 0 : index
    %c0_7 = arith.constant 0 : index
    %4 = vector.load %arg3[%c0_5, %c0_6, %c0_7] : memref<1x8x384xf32, #tpu.memory_space<vmem>>, vector<1x8x384xf32>
    %5 = vector.shape_cast %4 : vector<1x8x384xf32> to vector<8x384xf32>
    %c0_8 = arith.constant 0 : index
    %c0_9 = arith.constant 0 : index
    %6 = vector.load %arg4[%c0_8, %c0_9] : memref<16x144xf32, #tpu.memory_space<vmem>>, vector<16x144xf32>
    %c0_10 = arith.constant 0 : index
    %c0_11 = arith.constant 0 : index
    %7 = vector.load %arg5[%c0_10, %c0_11] : memref<2x144xf32, #tpu.memory_space<vmem>>, vector<2x144xf32>
    %c0_12 = arith.constant 0 : index
    %c0_13 = arith.constant 0 : index
    %8 = vector.load %arg6[%c0_12, %c0_13] : memref<8x72xf32, #tpu.memory_space<vmem>>, vector<8x72xf32>
    %c0_14 = arith.constant 0 : index
    %c0_15 = arith.constant 0 : index
    %9 = vector.load %arg7[%c0_14, %c0_15] : memref<2x72xf32, #tpu.memory_space<vmem>>, vector<2x72xf32>
    %c0_16 = arith.constant 0 : index
    %c0_17 = arith.constant 0 : index
    %10 = vector.load %arg8[%c0_16, %c0_17] : memref<8x72xf32, #tpu.memory_space<vmem>>, vector<8x72xf32>
    %c0_18 = arith.constant 0 : index
    %c0_19 = arith.constant 0 : index
    %11 = vector.load %arg9[%c0_18, %c0_19] : memref<9x72xf32, #tpu.memory_space<vmem>>, vector<9x72xf32>
    %c0_20 = arith.constant 0 : index
    %c0_21 = arith.constant 0 : index
    %12 = vector.load %arg10[%c0_20, %c0_21] : memref<128x128xf32, #tpu.memory_space<vmem>>, vector<128x128xf32>
    %c0_22 = arith.constant 0 : index
    %c0_23 = arith.constant 0 : index
    %13 = vector.load %arg11[%c0_22, %c0_23] : memref<128x384xf32, #tpu.memory_space<vmem>>, vector<128x384xf32>
    %c0_24 = arith.constant 0 : index
    %c0_25 = arith.constant 0 : index
    %14 = vector.load %arg12[%c0_24, %c0_25] : memref<1x128xf32, #tpu.memory_space<vmem>>, vector<1x128xf32>
    %cst = arith.constant 0.000000e+00 : f32
    %15 = vector.broadcast %cst : f32 to vector<1x128xf32>
    %16 = arith.cmpf one, %14, %15 : vector<1x128xf32>
    %c0_26 = arith.constant 0 : index
    %c0_27 = arith.constant 0 : index
    %17 = vector.load %arg13[%c0_26, %c0_27] : memref<1x128xf32, #tpu.memory_space<vmem>>, vector<1x128xf32>
    %cst_28 = arith.constant 0.000000e+00 : f32
    %18 = vector.broadcast %cst_28 : f32 to vector<1x128xf32>
    %19 = arith.cmpf one, %17, %18 : vector<1x128xf32>
    %c0_29 = arith.constant 0 : index
    %c0_30 = arith.constant 0 : index
    %20 = vector.load %arg14[%c0_29, %c0_30] : memref<1x384xf32, #tpu.memory_space<vmem>>, vector<1x384xf32>
    %cst_31 = arith.constant 0.000000e+00 : f32
    %21 = vector.broadcast %cst_31 : f32 to vector<1x384xf32>
    %22 = arith.cmpf one, %20, %21 : vector<1x384xf32>
    %cst_32 = arith.constant 0.000000e+00 : f32
    %23 = vector.broadcast %cst_32 : f32 to vector<16x7xf32>
    %c0_33 = arith.constant 0 : index
    %c0_34 = arith.constant 0 : index
    %24 = vector.load %arg20[%c0_33, %c0_34] : memref<16x142xf32, #tpu.memory_space<vmem>>, vector<16x7xf32>
    tpu.vector_store %arg20[%c0_33, %c0_34], %23 {strides = array<i32>} : memref<16x142xf32, #tpu.memory_space<vmem>>, vector<16x7xf32>,
    %cst_35 = arith.constant 0.000000e+00 : f32
    %25 = vector.broadcast %cst_35 : f32 to vector<16x7xf32>
    %c0_36 = arith.constant 0 : index
    %c135 = arith.constant 135 : index
    %26 = vector.load %arg20[%c0_36, %c135] : memref<16x142xf32, #tpu.memory_space<vmem>>, vector<16x7xf32>
    tpu.vector_store %arg20[%c0_36, %c135], %25 {strides = array<i32>} : memref<16x142xf32, #tpu.memory_space<vmem>>, vector<16x7xf32>,
    %cst_37 = arith.constant 0.000000e+00 : f32
    %27 = vector.broadcast %cst_37 : f32 to vector<8x11xf32>
    %c0_38 = arith.constant 0 : index
    %c0_39 = arith.constant 0 : index
    %28 = vector.load %arg22[%c0_38, %c0_39] : memref<8x150xf32, #tpu.memory_space<vmem>>, vector<8x11xf32>
    tpu.vector_store %arg22[%c0_38, %c0_39], %27 {strides = array<i32>} : memref<8x150xf32, #tpu.memory_space<vmem>>, vector<8x11xf32>,
    %cst_40 = arith.constant 0.000000e+00 : f32
    %29 = vector.broadcast %cst_40 : f32 to vector<8x11xf32>
    %c0_41 = arith.constant 0 : index
    %c139 = arith.constant 139 : index
    %30 = vector.load %arg22[%c0_41, %c139] : memref<8x150xf32, #tpu.memory_space<vmem>>, vector<8x11xf32>
    tpu.vector_store %arg22[%c0_41, %c139], %29 {strides = array<i32>} : memref<8x150xf32, #tpu.memory_space<vmem>>, vector<8x11xf32>,
    %cst_42 = arith.constant 0.000000e+00 : f32
    %31 = vector.broadcast %cst_42 : f32 to vector<8x19xf32>
    %c0_43 = arith.constant 0 : index
    %c0_44 = arith.constant 0 : index
    %32 = vector.load %arg24[%c0_43, %c0_44] : memref<8x422xf32, #tpu.memory_space<vmem>>, vector<8x19xf32>
    tpu.vector_store %arg24[%c0_43, %c0_44], %31 {strides = array<i32>} : memref<8x422xf32, #tpu.memory_space<vmem>>, vector<8x19xf32>,
    %cst_45 = arith.constant 0.000000e+00 : f32
    %33 = vector.broadcast %cst_45 : f32 to vector<8x19xf32>
    %c0_46 = arith.constant 0 : index
    %c403 = arith.constant 403 : index
    %34 = vector.load %arg24[%c0_46, %c403] : memref<8x422xf32, #tpu.memory_space<vmem>>, vector<8x19xf32>
    tpu.vector_store %arg24[%c0_46, %c403], %33 {strides = array<i32>} : memref<8x422xf32, #tpu.memory_space<vmem>>, vector<8x19xf32>,
    %c0_47 = arith.constant 0 : index
    %c7 = arith.constant 7 : index
    %35 = vector.load %arg20[%c0_47, %c7] : memref<16x142xf32, #tpu.memory_space<vmem>>, vector<16x128xf32>
    tpu.vector_store %arg20[%c0_47, %c7], %1 {strides = array<i32>} : memref<16x142xf32, #tpu.memory_space<vmem>>, vector<16x128xf32>,
    %c0_48 = arith.constant 0 : index
    %c0_49 = arith.constant 0 : index
    %36 = vector.load %arg20[%c0_48, %c0_49] : memref<16x142xf32, #tpu.memory_space<vmem>>, vector<16x128xf32>
    %c0_50 = arith.constant 0 : index
    %c0_51 = arith.constant 0 : index
    %37 = vector.load %arg21[%c0_50, %c0_51] : memref<144x128xf32, #tpu.memory_space<vmem>>, vector<16x128xf32>
    tpu.vector_store %arg21[%c0_50, %c0_51], %36 {strides = array<i32>} : memref<144x128xf32, #tpu.memory_space<vmem>>, vector<16x128xf32>,
    %c0_52 = arith.constant 0 : index
    %c1 = arith.constant 1 : index
    %38 = vector.load %arg20[%c0_52, %c1] : memref<16x142xf32, #tpu.memory_space<vmem>>, vector<16x128xf32>
    %c16 = arith.constant 16 : index
    %c0_53 = arith.constant 0 : index
    %39 = vector.load %arg21[%c16, %c0_53] : memref<144x128xf32, #tpu.memory_space<vmem>>, vector<16x128xf32>
    tpu.vector_store %arg21[%c16, %c0_53], %38 {strides = array<i32>} : memref<144x128xf32, #tpu.memory_space<vmem>>, vector<16x128xf32>,
    %c0_54 = arith.constant 0 : index
    %c2 = arith.constant 2 : index
    %40 = vector.load %arg20[%c0_54, %c2] : memref<16x142xf32, #tpu.memory_space<vmem>>, vector<16x128xf32>
    %c32 = arith.constant 32 : index
    %c0_55 = arith.constant 0 : index
    %41 = vector.load %arg21[%c32, %c0_55] : memref<144x128xf32, #tpu.memory_space<vmem>>, vector<16x128xf32>
    tpu.vector_store %arg21[%c32, %c0_55], %40 {strides = array<i32>} : memref<144x128xf32, #tpu.memory_space<vmem>>, vector<16x128xf32>,
    %c0_56 = arith.constant 0 : index
    %c6 = arith.constant 6 : index
    %42 = vector.load %arg20[%c0_56, %c6] : memref<16x142xf32, #tpu.memory_space<vmem>>, vector<16x128xf32>
    %c48 = arith.constant 48 : index
    %c0_57 = arith.constant 0 : index
    %43 = vector.load %arg21[%c48, %c0_57] : memref<144x128xf32, #tpu.memory_space<vmem>>, vector<16x128xf32>
    tpu.vector_store %arg21[%c48, %c0_57], %42 {strides = array<i32>} : memref<144x128xf32, #tpu.memory_space<vmem>>, vector<16x128xf32>,
    %c0_58 = arith.constant 0 : index
    %c7_59 = arith.constant 7 : index
    %44 = vector.load %arg20[%c0_58, %c7_59] : memref<16x142xf32, #tpu.memory_space<vmem>>, vector<16x128xf32>
    %c64 = arith.constant 64 : index
    %c0_60 = arith.constant 0 : index
    %45 = vector.load %arg21[%c64, %c0_60] : memref<144x128xf32, #tpu.memory_space<vmem>>, vector<16x128xf32>
    tpu.vector_store %arg21[%c64, %c0_60], %44 {strides = array<i32>} : memref<144x128xf32, #tpu.memory_space<vmem>>, vector<16x128xf32>,
    %c0_61 = arith.constant 0 : index
    %c8 = arith.constant 8 : index
    %46 = vector.load %arg20[%c0_61, %c8] : memref<16x142xf32, #tpu.memory_space<vmem>>, vector<16x128xf32>
    %c80 = arith.constant 80 : index
    %c0_62 = arith.constant 0 : index
    %47 = vector.load %arg21[%c80, %c0_62] : memref<144x128xf32, #tpu.memory_space<vmem>>, vector<16x128xf32>
    tpu.vector_store %arg21[%c80, %c0_62], %46 {strides = array<i32>} : memref<144x128xf32, #tpu.memory_space<vmem>>, vector<16x128xf32>,
    %c0_63 = arith.constant 0 : index
    %c12 = arith.constant 12 : index
    %48 = vector.load %arg20[%c0_63, %c12] : memref<16x142xf32, #tpu.memory_space<vmem>>, vector<16x128xf32>
    %c96 = arith.constant 96 : index
    %c0_64 = arith.constant 0 : index
    %49 = vector.load %arg21[%c96, %c0_64] : memref<144x128xf32, #tpu.memory_space<vmem>>, vector<16x128xf32>
    tpu.vector_store %arg21[%c96, %c0_64], %48 {strides = array<i32>} : memref<144x128xf32, #tpu.memory_space<vmem>>, vector<16x128xf32>,
    %c0_65 = arith.constant 0 : index
    %c13 = arith.constant 13 : index
    %50 = vector.load %arg20[%c0_65, %c13] : memref<16x142xf32, #tpu.memory_space<vmem>>, vector<16x128xf32>
    %c112 = arith.constant 112 : index
    %c0_66 = arith.constant 0 : index
    %51 = vector.load %arg21[%c112, %c0_66] : memref<144x128xf32, #tpu.memory_space<vmem>>, vector<16x128xf32>
    tpu.vector_store %arg21[%c112, %c0_66], %50 {strides = array<i32>} : memref<144x128xf32, #tpu.memory_space<vmem>>, vector<16x128xf32>,
    %c0_67 = arith.constant 0 : index
    %c14 = arith.constant 14 : index
    %52 = vector.load %arg20[%c0_67, %c14] : memref<16x142xf32, #tpu.memory_space<vmem>>, vector<16x128xf32>
    %c128 = arith.constant 128 : index
    %c0_68 = arith.constant 0 : index
    %53 = vector.load %arg21[%c128, %c0_68] : memref<144x128xf32, #tpu.memory_space<vmem>>, vector<16x128xf32>
    tpu.vector_store %arg21[%c128, %c0_68], %52 {strides = array<i32>} : memref<144x128xf32, #tpu.memory_space<vmem>>, vector<16x128xf32>,
    %c0_69 = arith.constant 0 : index
    %c0_70 = arith.constant 0 : index
    %54 = vector.load %arg21[%c0_69, %c0_70] : memref<144x128xf32, #tpu.memory_space<vmem>>, vector<144x128xf32>
    %cst_71 = arith.constant dense<0.000000e+00> : vector<16x128xf32>
    %55 = tpu.matmul %6, %54, %cst_71 {dimension_numbers = #tpu.dot_dimension_numbers<[1], [0], [0], [1], [0, 0, 1, 1], [], []>} : vector<16x144xf32>, vector<144x128xf32>, vector<16x128xf32> -> vector<16x128xf32>
    %cst_72 = arith.constant 0.000000e+00 : f32
    %56 = vector.shape_cast %16 : vector<1x128xi1> to vector<1x128xi1>
    %57 = vector.broadcast %56 : vector<1x128xi1> to vector<16x128xi1>
    %58 = vector.broadcast %cst_72 : f32 to vector<16x128xf32>
    %59 = arith.select %57, %55, %58 : vector<16x128xi1>, vector<16x128xf32>
    %c0_73 = arith.constant 0 : index
    %c7_74 = arith.constant 7 : index
    %60 = vector.load %arg20[%c0_73, %c7_74] : memref<16x142xf32, #tpu.memory_space<vmem>>, vector<16x128xf32>
    tpu.vector_store %arg20[%c0_73, %c7_74], %59 {strides = array<i32>} : memref<16x142xf32, #tpu.memory_space<vmem>>, vector<16x128xf32>,
    %c0_75 = arith.constant 0 : index
    %c0_76 = arith.constant 0 : index
    %61 = vector.load %arg20[%c0_75, %c0_76] : memref<16x142xf32, #tpu.memory_space<vmem>>, vector<16x128xf32>
    %c0_77 = arith.constant 0 : index
    %c0_78 = arith.constant 0 : index
    %62 = vector.load %arg21[%c0_77, %c0_78] : memref<144x128xf32, #tpu.memory_space<vmem>>, vector<16x128xf32>
    tpu.vector_store %arg21[%c0_77, %c0_78], %61 {strides = array<i32>} : memref<144x128xf32, #tpu.memory_space<vmem>>, vector<16x128xf32>,
    %c0_79 = arith.constant 0 : index
    %c1_80 = arith.constant 1 : index
    %63 = vector.load %arg20[%c0_79, %c1_80] : memref<16x142xf32, #tpu.memory_space<vmem>>, vector<16x128xf32>
    %c16_81 = arith.constant 16 : index
    %c0_82 = arith.constant 0 : index
    %64 = vector.load %arg21[%c16_81, %c0_82] : memref<144x128xf32, #tpu.memory_space<vmem>>, vector<16x128xf32>
    tpu.vector_store %arg21[%c16_81, %c0_82], %63 {strides = array<i32>} : memref<144x128xf32, #tpu.memory_space<vmem>>, vector<16x128xf32>,
    %c0_83 = arith.constant 0 : index
    %c2_84 = arith.constant 2 : index
    %65 = vector.load %arg20[%c0_83, %c2_84] : memref<16x142xf32, #tpu.memory_space<vmem>>, vector<16x128xf32>
    %c32_85 = arith.constant 32 : index
    %c0_86 = arith.constant 0 : index
    %66 = vector.load %arg21[%c32_85, %c0_86] : memref<144x128xf32, #tpu.memory_space<vmem>>, vector<16x128xf32>
    tpu.vector_store %arg21[%c32_85, %c0_86], %65 {strides = array<i32>} : memref<144x128xf32, #tpu.memory_space<vmem>>, vector<16x128xf32>,
    %c0_87 = arith.constant 0 : index
    %c6_88 = arith.constant 6 : index
    %67 = vector.load %arg20[%c0_87, %c6_88] : memref<16x142xf32, #tpu.memory_space<vmem>>, vector<16x128xf32>
    %c48_89 = arith.constant 48 : index
    %c0_90 = arith.constant 0 : index
    %68 = vector.load %arg21[%c48_89, %c0_90] : memref<144x128xf32, #tpu.memory_space<vmem>>, vector<16x128xf32>
    tpu.vector_store %arg21[%c48_89, %c0_90], %67 {strides = array<i32>} : memref<144x128xf32, #tpu.memory_space<vmem>>, vector<16x128xf32>,
    %c0_91 = arith.constant 0 : index
    %c7_92 = arith.constant 7 : index
    %69 = vector.load %arg20[%c0_91, %c7_92] : memref<16x142xf32, #tpu.memory_space<vmem>>, vector<16x128xf32>
    %c64_93 = arith.constant 64 : index
    %c0_94 = arith.constant 0 : index
    %70 = vector.load %arg21[%c64_93, %c0_94] : memref<144x128xf32, #tpu.memory_space<vmem>>, vector<16x128xf32>
    tpu.vector_store %arg21[%c64_93, %c0_94], %69 {strides = array<i32>} : memref<144x128xf32, #tpu.memory_space<vmem>>, vector<16x128xf32>,
    %c0_95 = arith.constant 0 : index
    %c8_96 = arith.constant 8 : index
    %71 = vector.load %arg20[%c0_95, %c8_96] : memref<16x142xf32, #tpu.memory_space<vmem>>, vector<16x128xf32>
    %c80_97 = arith.constant 80 : index
    %c0_98 = arith.constant 0 : index
    %72 = vector.load %arg21[%c80_97, %c0_98] : memref<144x128xf32, #tpu.memory_space<vmem>>, vector<16x128xf32>
    tpu.vector_store %arg21[%c80_97, %c0_98], %71 {strides = array<i32>} : memref<144x128xf32, #tpu.memory_space<vmem>>, vector<16x128xf32>,
    %c0_99 = arith.constant 0 : index
    %c12_100 = arith.constant 12 : index
    %73 = vector.load %arg20[%c0_99, %c12_100] : memref<16x142xf32, #tpu.memory_space<vmem>>, vector<16x128xf32>
    %c96_101 = arith.constant 96 : index
    %c0_102 = arith.constant 0 : index
    %74 = vector.load %arg21[%c96_101, %c0_102] : memref<144x128xf32, #tpu.memory_space<vmem>>, vector<16x128xf32>
    tpu.vector_store %arg21[%c96_101, %c0_102], %73 {strides = array<i32>} : memref<144x128xf32, #tpu.memory_space<vmem>>, vector<16x128xf32>,
    %c0_103 = arith.constant 0 : index
    %c13_104 = arith.constant 13 : index
    %75 = vector.load %arg20[%c0_103, %c13_104] : memref<16x142xf32, #tpu.memory_space<vmem>>, vector<16x128xf32>
    %c112_105 = arith.constant 112 : index
    %c0_106 = arith.constant 0 : index
    %76 = vector.load %arg21[%c112_105, %c0_106] : memref<144x128xf32, #tpu.memory_space<vmem>>, vector<16x128xf32>
    tpu.vector_store %arg21[%c112_105, %c0_106], %75 {strides = array<i32>} : memref<144x128xf32, #tpu.memory_space<vmem>>, vector<16x128xf32>,
    %c0_107 = arith.constant 0 : index
    %c14_108 = arith.constant 14 : index
    %77 = vector.load %arg20[%c0_107, %c14_108] : memref<16x142xf32, #tpu.memory_space<vmem>>, vector<16x128xf32>
    %c128_109 = arith.constant 128 : index
    %c0_110 = arith.constant 0 : index
    %78 = vector.load %arg21[%c128_109, %c0_110] : memref<144x128xf32, #tpu.memory_space<vmem>>, vector<16x128xf32>
    tpu.vector_store %arg21[%c128_109, %c0_110], %77 {strides = array<i32>} : memref<144x128xf32, #tpu.memory_space<vmem>>, vector<16x128xf32>,
    %c0_111 = arith.constant 0 : index
    %c0_112 = arith.constant 0 : index
    %79 = vector.load %arg21[%c0_111, %c0_112] : memref<144x128xf32, #tpu.memory_space<vmem>>, vector<144x128xf32>
    %cst_113 = arith.constant dense<0.000000e+00> : vector<2x128xf32>
    %80 = tpu.matmul %7, %79, %cst_113 {dimension_numbers = #tpu.dot_dimension_numbers<[1], [0], [0], [1], [0, 0, 1, 1], [], []>} : vector<2x144xf32>, vector<144x128xf32>, vector<2x128xf32> -> vector<2x128xf32>
    %cst_114 = arith.constant 0.000000e+00 : f32
    %81 = vector.shape_cast %16 : vector<1x128xi1> to vector<1x128xi1>
    %82 = vector.broadcast %81 : vector<1x128xi1> to vector<2x128xi1>
    %83 = vector.broadcast %cst_114 : f32 to vector<2x128xf32>
    %84 = arith.select %82, %80, %83 : vector<2x128xi1>, vector<2x128xf32>
    %c0_115 = arith.constant 0 : index
    %c0_116 = arith.constant 0 : index
    %c0_117 = arith.constant 0 : index
    %85 = vector.load %arg15[%c0_115, %c0_116, %c0_117] : memref<1x2x128xf32, #tpu.memory_space<vmem>>, vector<1x2x128xf32>
    %86 = vector.shape_cast %85 : vector<1x2x128xf32> to vector<2x128xf32>
    %87 = vector.shape_cast %84 : vector<2x128xf32> to vector<1x2x128xf32>
    tpu.vector_store %arg15[%c0_115, %c0_116, %c0_117], %87 {strides = array<i32>} : memref<1x2x128xf32, #tpu.memory_space<vmem>>, vector<1x2x128xf32>,
    %88 = vector.extract_strided_slice %84 {offsets = [1, 0], sizes = [1, 128], strides = [1, 1]} : vector<2x128xf32> to vector<1x128xf32>
    %89 = vector.extract_strided_slice %84 {offsets = [0, 0], sizes = [1, 128], strides = [1, 1]} : vector<2x128xf32> to vector<1x128xf32>
    %90 = arith.subf %88, %89 : vector<1x128xf32>
    %cst_118 = arith.constant 1.38629436 : f32
    %91 = vector.broadcast %cst_118 : f32 to vector<1x128xf32>
    %92 = arith.cmpf ogt, %90, %91 : vector<1x128xf32>
    %cst_119 = arith.constant 1.000000e+00 : f32
    %cst_120 = arith.constant 0.000000e+00 : f32
    %93 = vector.broadcast %cst_119 : f32 to vector<1x128xf32>
    %94 = vector.broadcast %cst_120 : f32 to vector<1x128xf32>
    %95 = arith.select %92, %93, %94 : vector<1x128xi1>, vector<1x128xf32>
    %cst_121 = arith.constant dense<0.000000e+00> : vector<1x128xf32>
    %96 = tpu.matmul %95, %12, %cst_121 {dimension_numbers = #tpu.dot_dimension_numbers<[1], [0], [0], [1], [0, 0, 1, 1], [], []>} : vector<1x128xf32>, vector<128x128xf32>, vector<1x128xf32> -> vector<1x128xf32>
    %c0_122 = arith.constant 0 : index
    %c0_123 = arith.constant 0 : index
    %c0_124 = arith.constant 0 : index
    %97 = vector.load %arg18[%c0_122, %c0_123, %c0_124] : memref<1x1x128xf32, #tpu.memory_space<vmem>>, vector<1x1x128xf32>
    %98 = vector.shape_cast %97 : vector<1x1x128xf32> to vector<1x128xf32>
    %99 = vector.shape_cast %96 : vector<1x128xf32> to vector<1x1x128xf32>
    tpu.vector_store %arg18[%c0_122, %c0_123, %c0_124], %99 {strides = array<i32>} : memref<1x1x128xf32, #tpu.memory_space<vmem>>, vector<1x1x128xf32>,
    %100 = vector.broadcast %96 : vector<1x128xf32> to vector<8x128xf32>
    %101 = arith.mulf %3, %100 : vector<8x128xf32>
    %c0_125 = arith.constant 0 : index
    %c11 = arith.constant 11 : index
    %102 = vector.load %arg22[%c0_125, %c11] : memref<8x150xf32, #tpu.memory_space<vmem>>, vector<8x128xf32>
    tpu.vector_store %arg22[%c0_125, %c11], %101 {strides = array<i32>} : memref<8x150xf32, #tpu.memory_space<vmem>>, vector<8x128xf32>,
    %c0_126 = arith.constant 0 : index
    %c0_127 = arith.constant 0 : index
    %103 = vector.load %arg22[%c0_126, %c0_127] : memref<8x150xf32, #tpu.memory_space<vmem>>, vector<8x128xf32>
    %c0_128 = arith.constant 0 : index
    %c0_129 = arith.constant 0 : index
    %104 = vector.load %arg23[%c0_128, %c0_129] : memref<72x128xf32, #tpu.memory_space<vmem>>, vector<8x128xf32>
    tpu.vector_store %arg23[%c0_128, %c0_129], %103 {strides = array<i32>} : memref<72x128xf32, #tpu.memory_space<vmem>>, vector<8x128xf32>,
    %c0_130 = arith.constant 0 : index
    %c1_131 = arith.constant 1 : index
    %105 = vector.load %arg22[%c0_130, %c1_131] : memref<8x150xf32, #tpu.memory_space<vmem>>, vector<8x128xf32>
    %c8_132 = arith.constant 8 : index
    %c0_133 = arith.constant 0 : index
    %106 = vector.load %arg23[%c8_132, %c0_133] : memref<72x128xf32, #tpu.memory_space<vmem>>, vector<8x128xf32>
    tpu.vector_store %arg23[%c8_132, %c0_133], %105 {strides = array<i32>} : memref<72x128xf32, #tpu.memory_space<vmem>>, vector<8x128xf32>,
    %c0_134 = arith.constant 0 : index
    %c2_135 = arith.constant 2 : index
    %107 = vector.load %arg22[%c0_134, %c2_135] : memref<8x150xf32, #tpu.memory_space<vmem>>, vector<8x128xf32>
    %c16_136 = arith.constant 16 : index
    %c0_137 = arith.constant 0 : index
    %108 = vector.load %arg23[%c16_136, %c0_137] : memref<72x128xf32, #tpu.memory_space<vmem>>, vector<8x128xf32>
    tpu.vector_store %arg23[%c16_136, %c0_137], %107 {strides = array<i32>} : memref<72x128xf32, #tpu.memory_space<vmem>>, vector<8x128xf32>,
    %c0_138 = arith.constant 0 : index
    %c10 = arith.constant 10 : index
    %109 = vector.load %arg22[%c0_138, %c10] : memref<8x150xf32, #tpu.memory_space<vmem>>, vector<8x128xf32>
    %c24 = arith.constant 24 : index
    %c0_139 = arith.constant 0 : index
    %110 = vector.load %arg23[%c24, %c0_139] : memref<72x128xf32, #tpu.memory_space<vmem>>, vector<8x128xf32>
    tpu.vector_store %arg23[%c24, %c0_139], %109 {strides = array<i32>} : memref<72x128xf32, #tpu.memory_space<vmem>>, vector<8x128xf32>,
    %c0_140 = arith.constant 0 : index
    %c11_141 = arith.constant 11 : index
    %111 = vector.load %arg22[%c0_140, %c11_141] : memref<8x150xf32, #tpu.memory_space<vmem>>, vector<8x128xf32>
    %c32_142 = arith.constant 32 : index
    %c0_143 = arith.constant 0 : index
    %112 = vector.load %arg23[%c32_142, %c0_143] : memref<72x128xf32, #tpu.memory_space<vmem>>, vector<8x128xf32>
    tpu.vector_store %arg23[%c32_142, %c0_143], %111 {strides = array<i32>} : memref<72x128xf32, #tpu.memory_space<vmem>>, vector<8x128xf32>,
    %c0_144 = arith.constant 0 : index
    %c12_145 = arith.constant 12 : index
    %113 = vector.load %arg22[%c0_144, %c12_145] : memref<8x150xf32, #tpu.memory_space<vmem>>, vector<8x128xf32>
    %c40 = arith.constant 40 : index
    %c0_146 = arith.constant 0 : index
    %114 = vector.load %arg23[%c40, %c0_146] : memref<72x128xf32, #tpu.memory_space<vmem>>, vector<8x128xf32>
    tpu.vector_store %arg23[%c40, %c0_146], %113 {strides = array<i32>} : memref<72x128xf32, #tpu.memory_space<vmem>>, vector<8x128xf32>,
    %c0_147 = arith.constant 0 : index
    %c20 = arith.constant 20 : index
    %115 = vector.load %arg22[%c0_147, %c20] : memref<8x150xf32, #tpu.memory_space<vmem>>, vector<8x128xf32>
    %c48_148 = arith.constant 48 : index
    %c0_149 = arith.constant 0 : index
    %116 = vector.load %arg23[%c48_148, %c0_149] : memref<72x128xf32, #tpu.memory_space<vmem>>, vector<8x128xf32>
    tpu.vector_store %arg23[%c48_148, %c0_149], %115 {strides = array<i32>} : memref<72x128xf32, #tpu.memory_space<vmem>>, vector<8x128xf32>,
    %c0_150 = arith.constant 0 : index
    %c21 = arith.constant 21 : index
    %117 = vector.load %arg22[%c0_150, %c21] : memref<8x150xf32, #tpu.memory_space<vmem>>, vector<8x128xf32>
    %c56 = arith.constant 56 : index
    %c0_151 = arith.constant 0 : index
    %118 = vector.load %arg23[%c56, %c0_151] : memref<72x128xf32, #tpu.memory_space<vmem>>, vector<8x128xf32>
    tpu.vector_store %arg23[%c56, %c0_151], %117 {strides = array<i32>} : memref<72x128xf32, #tpu.memory_space<vmem>>, vector<8x128xf32>,
    %c0_152 = arith.constant 0 : index
    %c22 = arith.constant 22 : index
    %119 = vector.load %arg22[%c0_152, %c22] : memref<8x150xf32, #tpu.memory_space<vmem>>, vector<8x128xf32>
    %c64_153 = arith.constant 64 : index
    %c0_154 = arith.constant 0 : index
    %120 = vector.load %arg23[%c64_153, %c0_154] : memref<72x128xf32, #tpu.memory_space<vmem>>, vector<8x128xf32>
    tpu.vector_store %arg23[%c64_153, %c0_154], %119 {strides = array<i32>} : memref<72x128xf32, #tpu.memory_space<vmem>>, vector<8x128xf32>,
    %c0_155 = arith.constant 0 : index
    %c0_156 = arith.constant 0 : index
    %121 = vector.load %arg23[%c0_155, %c0_156] : memref<72x128xf32, #tpu.memory_space<vmem>>, vector<72x128xf32>
    %cst_157 = arith.constant dense<0.000000e+00> : vector<8x128xf32>
    %122 = tpu.matmul %8, %121, %cst_157 {dimension_numbers = #tpu.dot_dimension_numbers<[1], [0], [0], [1], [0, 0, 1, 1], [], []>} : vector<8x72xf32>, vector<72x128xf32>, vector<8x128xf32> -> vector<8x128xf32>
    %cst_158 = arith.constant 0.000000e+00 : f32
    %123 = vector.shape_cast %19 : vector<1x128xi1> to vector<1x128xi1>
    %124 = vector.broadcast %123 : vector<1x128xi1> to vector<8x128xi1>
    %125 = vector.broadcast %cst_158 : f32 to vector<8x128xf32>
    %126 = arith.select %124, %122, %125 : vector<8x128xi1>, vector<8x128xf32>
    %c0_159 = arith.constant 0 : index
    %c11_160 = arith.constant 11 : index
    %127 = vector.load %arg22[%c0_159, %c11_160] : memref<8x150xf32, #tpu.memory_space<vmem>>, vector<8x128xf32>
    tpu.vector_store %arg22[%c0_159, %c11_160], %126 {strides = array<i32>} : memref<8x150xf32, #tpu.memory_space<vmem>>, vector<8x128xf32>,
    %c0_161 = arith.constant 0 : index
    %c0_162 = arith.constant 0 : index
    %128 = vector.load %arg22[%c0_161, %c0_162] : memref<8x150xf32, #tpu.memory_space<vmem>>, vector<8x128xf32>
    %c0_163 = arith.constant 0 : index
    %c0_164 = arith.constant 0 : index
    %129 = vector.load %arg23[%c0_163, %c0_164] : memref<72x128xf32, #tpu.memory_space<vmem>>, vector<8x128xf32>
    tpu.vector_store %arg23[%c0_163, %c0_164], %128 {strides = array<i32>} : memref<72x128xf32, #tpu.memory_space<vmem>>, vector<8x128xf32>,
    %c0_165 = arith.constant 0 : index
    %c1_166 = arith.constant 1 : index
    %130 = vector.load %arg22[%c0_165, %c1_166] : memref<8x150xf32, #tpu.memory_space<vmem>>, vector<8x128xf32>
    %c8_167 = arith.constant 8 : index
    %c0_168 = arith.constant 0 : index
    %131 = vector.load %arg23[%c8_167, %c0_168] : memref<72x128xf32, #tpu.memory_space<vmem>>, vector<8x128xf32>
    tpu.vector_store %arg23[%c8_167, %c0_168], %130 {strides = array<i32>} : memref<72x128xf32, #tpu.memory_space<vmem>>, vector<8x128xf32>,
    %c0_169 = arith.constant 0 : index
    %c2_170 = arith.constant 2 : index
    %132 = vector.load %arg22[%c0_169, %c2_170] : memref<8x150xf32, #tpu.memory_space<vmem>>, vector<8x128xf32>
    %c16_171 = arith.constant 16 : index
    %c0_172 = arith.constant 0 : index
    %133 = vector.load %arg23[%c16_171, %c0_172] : memref<72x128xf32, #tpu.memory_space<vmem>>, vector<8x128xf32>
    tpu.vector_store %arg23[%c16_171, %c0_172], %132 {strides = array<i32>} : memref<72x128xf32, #tpu.memory_space<vmem>>, vector<8x128xf32>,
    %c0_173 = arith.constant 0 : index
    %c10_174 = arith.constant 10 : index
    %134 = vector.load %arg22[%c0_173, %c10_174] : memref<8x150xf32, #tpu.memory_space<vmem>>, vector<8x128xf32>
    %c24_175 = arith.constant 24 : index
    %c0_176 = arith.constant 0 : index
    %135 = vector.load %arg23[%c24_175, %c0_176] : memref<72x128xf32, #tpu.memory_space<vmem>>, vector<8x128xf32>
    tpu.vector_store %arg23[%c24_175, %c0_176], %134 {strides = array<i32>} : memref<72x128xf32, #tpu.memory_space<vmem>>, vector<8x128xf32>,
    %c0_177 = arith.constant 0 : index
    %c11_178 = arith.constant 11 : index
    %136 = vector.load %arg22[%c0_177, %c11_178] : memref<8x150xf32, #tpu.memory_space<vmem>>, vector<8x128xf32>
    %c32_179 = arith.constant 32 : index
    %c0_180 = arith.constant 0 : index
    %137 = vector.load %arg23[%c32_179, %c0_180] : memref<72x128xf32, #tpu.memory_space<vmem>>, vector<8x128xf32>
    tpu.vector_store %arg23[%c32_179, %c0_180], %136 {strides = array<i32>} : memref<72x128xf32, #tpu.memory_space<vmem>>, vector<8x128xf32>,
    %c0_181 = arith.constant 0 : index
    %c12_182 = arith.constant 12 : index
    %138 = vector.load %arg22[%c0_181, %c12_182] : memref<8x150xf32, #tpu.memory_space<vmem>>, vector<8x128xf32>
    %c40_183 = arith.constant 40 : index
    %c0_184 = arith.constant 0 : index
    %139 = vector.load %arg23[%c40_183, %c0_184] : memref<72x128xf32, #tpu.memory_space<vmem>>, vector<8x128xf32>
    tpu.vector_store %arg23[%c40_183, %c0_184], %138 {strides = array<i32>} : memref<72x128xf32, #tpu.memory_space<vmem>>, vector<8x128xf32>,
    %c0_185 = arith.constant 0 : index
    %c20_186 = arith.constant 20 : index
    %140 = vector.load %arg22[%c0_185, %c20_186] : memref<8x150xf32, #tpu.memory_space<vmem>>, vector<8x128xf32>
    %c48_187 = arith.constant 48 : index
    %c0_188 = arith.constant 0 : index
    %141 = vector.load %arg23[%c48_187, %c0_188] : memref<72x128xf32, #tpu.memory_space<vmem>>, vector<8x128xf32>
    tpu.vector_store %arg23[%c48_187, %c0_188], %140 {strides = array<i32>} : memref<72x128xf32, #tpu.memory_space<vmem>>, vector<8x128xf32>,
    %c0_189 = arith.constant 0 : index
    %c21_190 = arith.constant 21 : index
    %142 = vector.load %arg22[%c0_189, %c21_190] : memref<8x150xf32, #tpu.memory_space<vmem>>, vector<8x128xf32>
    %c56_191 = arith.constant 56 : index
    %c0_192 = arith.constant 0 : index
    %143 = vector.load %arg23[%c56_191, %c0_192] : memref<72x128xf32, #tpu.memory_space<vmem>>, vector<8x128xf32>
    tpu.vector_store %arg23[%c56_191, %c0_192], %142 {strides = array<i32>} : memref<72x128xf32, #tpu.memory_space<vmem>>, vector<8x128xf32>,
    %c0_193 = arith.constant 0 : index
    %c22_194 = arith.constant 22 : index
    %144 = vector.load %arg22[%c0_193, %c22_194] : memref<8x150xf32, #tpu.memory_space<vmem>>, vector<8x128xf32>
    %c64_195 = arith.constant 64 : index
    %c0_196 = arith.constant 0 : index
    %145 = vector.load %arg23[%c64_195, %c0_196] : memref<72x128xf32, #tpu.memory_space<vmem>>, vector<8x128xf32>
    tpu.vector_store %arg23[%c64_195, %c0_196], %144 {strides = array<i32>} : memref<72x128xf32, #tpu.memory_space<vmem>>, vector<8x128xf32>,
    %c0_197 = arith.constant 0 : index
    %c0_198 = arith.constant 0 : index
    %146 = vector.load %arg23[%c0_197, %c0_198] : memref<72x128xf32, #tpu.memory_space<vmem>>, vector<72x128xf32>
    %cst_199 = arith.constant dense<0.000000e+00> : vector<2x128xf32>
    %147 = tpu.matmul %9, %146, %cst_199 {dimension_numbers = #tpu.dot_dimension_numbers<[1], [0], [0], [1], [0, 0, 1, 1], [], []>} : vector<2x72xf32>, vector<72x128xf32>, vector<2x128xf32> -> vector<2x128xf32>
    %cst_200 = arith.constant 0.000000e+00 : f32
    %148 = vector.shape_cast %19 : vector<1x128xi1> to vector<1x128xi1>
    %149 = vector.broadcast %148 : vector<1x128xi1> to vector<2x128xi1>
    %150 = vector.broadcast %cst_200 : f32 to vector<2x128xf32>
    %151 = arith.select %149, %147, %150 : vector<2x128xi1>, vector<2x128xf32>
    %c0_201 = arith.constant 0 : index
    %c0_202 = arith.constant 0 : index
    %c0_203 = arith.constant 0 : index
    %152 = vector.load %arg16[%c0_201, %c0_202, %c0_203] : memref<1x2x128xf32, #tpu.memory_space<vmem>>, vector<1x2x128xf32>
    %153 = vector.shape_cast %152 : vector<1x2x128xf32> to vector<2x128xf32>
    %154 = vector.shape_cast %151 : vector<2x128xf32> to vector<1x2x128xf32>
    tpu.vector_store %arg16[%c0_201, %c0_202, %c0_203], %154 {strides = array<i32>} : memref<1x2x128xf32, #tpu.memory_space<vmem>>, vector<1x2x128xf32>,
    %155 = vector.extract_strided_slice %151 {offsets = [1, 0], sizes = [1, 128], strides = [1, 1]} : vector<2x128xf32> to vector<1x128xf32>
    %156 = vector.extract_strided_slice %151 {offsets = [0, 0], sizes = [1, 128], strides = [1, 1]} : vector<2x128xf32> to vector<1x128xf32>
    %157 = arith.subf %155, %156 : vector<1x128xf32>
    %cst_204 = arith.constant 1.38629436 : f32
    %158 = vector.broadcast %cst_204 : f32 to vector<1x128xf32>
    %159 = arith.cmpf ogt, %157, %158 : vector<1x128xf32>
    %cst_205 = arith.constant 1.000000e+00 : f32
    %cst_206 = arith.constant 0.000000e+00 : f32
    %160 = vector.broadcast %cst_205 : f32 to vector<1x128xf32>
    %161 = vector.broadcast %cst_206 : f32 to vector<1x128xf32>
    %162 = arith.select %159, %160, %161 : vector<1x128xi1>, vector<1x128xf32>
    %cst_207 = arith.constant dense<0.000000e+00> : vector<1x384xf32>
    %163 = tpu.matmul %162, %13, %cst_207 {dimension_numbers = #tpu.dot_dimension_numbers<[1], [0], [0], [1], [0, 0, 1, 1], [], []>} : vector<1x128xf32>, vector<128x384xf32>, vector<1x384xf32> -> vector<1x384xf32>
    %c0_208 = arith.constant 0 : index
    %c0_209 = arith.constant 0 : index
    %c0_210 = arith.constant 0 : index
    %164 = vector.load %arg19[%c0_208, %c0_209, %c0_210] : memref<1x1x384xf32, #tpu.memory_space<vmem>>, vector<1x1x384xf32>
    %165 = vector.shape_cast %164 : vector<1x1x384xf32> to vector<1x384xf32>
    %166 = vector.shape_cast %163 : vector<1x384xf32> to vector<1x1x384xf32>
    tpu.vector_store %arg19[%c0_208, %c0_209, %c0_210], %166 {strides = array<i32>} : memref<1x1x384xf32, #tpu.memory_space<vmem>>, vector<1x1x384xf32>,
    %167 = vector.broadcast %163 : vector<1x384xf32> to vector<8x384xf32>
    %168 = arith.mulf %5, %167 : vector<8x384xf32>
    %c0_211 = arith.constant 0 : index
    %c19 = arith.constant 19 : index
    %169 = vector.load %arg24[%c0_211, %c19] : memref<8x422xf32, #tpu.memory_space<vmem>>, vector<8x384xf32>
    tpu.vector_store %arg24[%c0_211, %c19], %168 {strides = array<i32>} : memref<8x422xf32, #tpu.memory_space<vmem>>, vector<8x384xf32>,
    %c0_212 = arith.constant 0 : index
    %c0_213 = arith.constant 0 : index
    %170 = vector.load %arg24[%c0_212, %c0_213] : memref<8x422xf32, #tpu.memory_space<vmem>>, vector<8x384xf32>
    %c0_214 = arith.constant 0 : index
    %c0_215 = arith.constant 0 : index
    %171 = vector.load %arg25[%c0_214, %c0_215] : memref<72x384xf32, #tpu.memory_space<vmem>>, vector<8x384xf32>
    tpu.vector_store %arg25[%c0_214, %c0_215], %170 {strides = array<i32>} : memref<72x384xf32, #tpu.memory_space<vmem>>, vector<8x384xf32>,
    %c0_216 = arith.constant 0 : index
    %c1_217 = arith.constant 1 : index
    %172 = vector.load %arg24[%c0_216, %c1_217] : memref<8x422xf32, #tpu.memory_space<vmem>>, vector<8x384xf32>
    %c8_218 = arith.constant 8 : index
    %c0_219 = arith.constant 0 : index
    %173 = vector.load %arg25[%c8_218, %c0_219] : memref<72x384xf32, #tpu.memory_space<vmem>>, vector<8x384xf32>
    tpu.vector_store %arg25[%c8_218, %c0_219], %172 {strides = array<i32>} : memref<72x384xf32, #tpu.memory_space<vmem>>, vector<8x384xf32>,
    %c0_220 = arith.constant 0 : index
    %c2_221 = arith.constant 2 : index
    %174 = vector.load %arg24[%c0_220, %c2_221] : memref<8x422xf32, #tpu.memory_space<vmem>>, vector<8x384xf32>
    %c16_222 = arith.constant 16 : index
    %c0_223 = arith.constant 0 : index
    %175 = vector.load %arg25[%c16_222, %c0_223] : memref<72x384xf32, #tpu.memory_space<vmem>>, vector<8x384xf32>
    tpu.vector_store %arg25[%c16_222, %c0_223], %174 {strides = array<i32>} : memref<72x384xf32, #tpu.memory_space<vmem>>, vector<8x384xf32>,
    %c0_224 = arith.constant 0 : index
    %c18 = arith.constant 18 : index
    %176 = vector.load %arg24[%c0_224, %c18] : memref<8x422xf32, #tpu.memory_space<vmem>>, vector<8x384xf32>
    %c24_225 = arith.constant 24 : index
    %c0_226 = arith.constant 0 : index
    %177 = vector.load %arg25[%c24_225, %c0_226] : memref<72x384xf32, #tpu.memory_space<vmem>>, vector<8x384xf32>
    tpu.vector_store %arg25[%c24_225, %c0_226], %176 {strides = array<i32>} : memref<72x384xf32, #tpu.memory_space<vmem>>, vector<8x384xf32>,
    %c0_227 = arith.constant 0 : index
    %c19_228 = arith.constant 19 : index
    %178 = vector.load %arg24[%c0_227, %c19_228] : memref<8x422xf32, #tpu.memory_space<vmem>>, vector<8x384xf32>
    %c32_229 = arith.constant 32 : index
    %c0_230 = arith.constant 0 : index
    %179 = vector.load %arg25[%c32_229, %c0_230] : memref<72x384xf32, #tpu.memory_space<vmem>>, vector<8x384xf32>
    tpu.vector_store %arg25[%c32_229, %c0_230], %178 {strides = array<i32>} : memref<72x384xf32, #tpu.memory_space<vmem>>, vector<8x384xf32>,
    %c0_231 = arith.constant 0 : index
    %c20_232 = arith.constant 20 : index
    %180 = vector.load %arg24[%c0_231, %c20_232] : memref<8x422xf32, #tpu.memory_space<vmem>>, vector<8x384xf32>
    %c40_233 = arith.constant 40 : index
    %c0_234 = arith.constant 0 : index
    %181 = vector.load %arg25[%c40_233, %c0_234] : memref<72x384xf32, #tpu.memory_space<vmem>>, vector<8x384xf32>
    tpu.vector_store %arg25[%c40_233, %c0_234], %180 {strides = array<i32>} : memref<72x384xf32, #tpu.memory_space<vmem>>, vector<8x384xf32>,
    %c0_235 = arith.constant 0 : index
    %c36 = arith.constant 36 : index
    %182 = vector.load %arg24[%c0_235, %c36] : memref<8x422xf32, #tpu.memory_space<vmem>>, vector<8x384xf32>
    %c48_236 = arith.constant 48 : index
    %c0_237 = arith.constant 0 : index
    %183 = vector.load %arg25[%c48_236, %c0_237] : memref<72x384xf32, #tpu.memory_space<vmem>>, vector<8x384xf32>
    tpu.vector_store %arg25[%c48_236, %c0_237], %182 {strides = array<i32>} : memref<72x384xf32, #tpu.memory_space<vmem>>, vector<8x384xf32>,
    %c0_238 = arith.constant 0 : index
    %c37 = arith.constant 37 : index
    %184 = vector.load %arg24[%c0_238, %c37] : memref<8x422xf32, #tpu.memory_space<vmem>>, vector<8x384xf32>
    %c56_239 = arith.constant 56 : index
    %c0_240 = arith.constant 0 : index
    %185 = vector.load %arg25[%c56_239, %c0_240] : memref<72x384xf32, #tpu.memory_space<vmem>>, vector<8x384xf32>
    tpu.vector_store %arg25[%c56_239, %c0_240], %184 {strides = array<i32>} : memref<72x384xf32, #tpu.memory_space<vmem>>, vector<8x384xf32>,
    %c0_241 = arith.constant 0 : index
    %c38 = arith.constant 38 : index
    %186 = vector.load %arg24[%c0_241, %c38] : memref<8x422xf32, #tpu.memory_space<vmem>>, vector<8x384xf32>
    %c64_242 = arith.constant 64 : index
    %c0_243 = arith.constant 0 : index
    %187 = vector.load %arg25[%c64_242, %c0_243] : memref<72x384xf32, #tpu.memory_space<vmem>>, vector<8x384xf32>
    tpu.vector_store %arg25[%c64_242, %c0_243], %186 {strides = array<i32>} : memref<72x384xf32, #tpu.memory_space<vmem>>, vector<8x384xf32>,
    %c0_244 = arith.constant 0 : index
    %c0_245 = arith.constant 0 : index
    %188 = vector.load %arg25[%c0_244, %c0_245] : memref<72x384xf32, #tpu.memory_space<vmem>>, vector<72x384xf32>
    %cst_246 = arith.constant dense<0.000000e+00> : vector<8x384xf32>
    %189 = tpu.matmul %10, %188, %cst_246 {dimension_numbers = #tpu.dot_dimension_numbers<[1], [0], [0], [1], [0, 0, 1, 1], [], []>} : vector<8x72xf32>, vector<72x384xf32>, vector<8x384xf32> -> vector<8x384xf32>
    %cst_247 = arith.constant 0.000000e+00 : f32
    %190 = vector.shape_cast %22 : vector<1x384xi1> to vector<1x384xi1>
    %191 = vector.broadcast %190 : vector<1x384xi1> to vector<8x384xi1>
    %192 = vector.broadcast %cst_247 : f32 to vector<8x384xf32>
    %193 = arith.select %191, %189, %192 : vector<8x384xi1>, vector<8x384xf32>
    %c0_248 = arith.constant 0 : index
    %c19_249 = arith.constant 19 : index
    %194 = vector.load %arg24[%c0_248, %c19_249] : memref<8x422xf32, #tpu.memory_space<vmem>>, vector<8x384xf32>
    tpu.vector_store %arg24[%c0_248, %c19_249], %193 {strides = array<i32>} : memref<8x422xf32, #tpu.memory_space<vmem>>, vector<8x384xf32>,
    %c0_250 = arith.constant 0 : index
    %c0_251 = arith.constant 0 : index
    %195 = vector.load %arg24[%c0_250, %c0_251] : memref<8x422xf32, #tpu.memory_space<vmem>>, vector<8x384xf32>
    %c0_252 = arith.constant 0 : index
    %c0_253 = arith.constant 0 : index
    %196 = vector.load %arg25[%c0_252, %c0_253] : memref<72x384xf32, #tpu.memory_space<vmem>>, vector<8x384xf32>
    tpu.vector_store %arg25[%c0_252, %c0_253], %195 {strides = array<i32>} : memref<72x384xf32, #tpu.memory_space<vmem>>, vector<8x384xf32>,
    %c0_254 = arith.constant 0 : index
    %c1_255 = arith.constant 1 : index
    %197 = vector.load %arg24[%c0_254, %c1_255] : memref<8x422xf32, #tpu.memory_space<vmem>>, vector<8x384xf32>
    %c8_256 = arith.constant 8 : index
    %c0_257 = arith.constant 0 : index
    %198 = vector.load %arg25[%c8_256, %c0_257] : memref<72x384xf32, #tpu.memory_space<vmem>>, vector<8x384xf32>
    tpu.vector_store %arg25[%c8_256, %c0_257], %197 {strides = array<i32>} : memref<72x384xf32, #tpu.memory_space<vmem>>, vector<8x384xf32>,
    %c0_258 = arith.constant 0 : index
    %c2_259 = arith.constant 2 : index
    %199 = vector.load %arg24[%c0_258, %c2_259] : memref<8x422xf32, #tpu.memory_space<vmem>>, vector<8x384xf32>
    %c16_260 = arith.constant 16 : index
    %c0_261 = arith.constant 0 : index
    %200 = vector.load %arg25[%c16_260, %c0_261] : memref<72x384xf32, #tpu.memory_space<vmem>>, vector<8x384xf32>
    tpu.vector_store %arg25[%c16_260, %c0_261], %199 {strides = array<i32>} : memref<72x384xf32, #tpu.memory_space<vmem>>, vector<8x384xf32>,
    %c0_262 = arith.constant 0 : index
    %c18_263 = arith.constant 18 : index
    %201 = vector.load %arg24[%c0_262, %c18_263] : memref<8x422xf32, #tpu.memory_space<vmem>>, vector<8x384xf32>
    %c24_264 = arith.constant 24 : index
    %c0_265 = arith.constant 0 : index
    %202 = vector.load %arg25[%c24_264, %c0_265] : memref<72x384xf32, #tpu.memory_space<vmem>>, vector<8x384xf32>
    tpu.vector_store %arg25[%c24_264, %c0_265], %201 {strides = array<i32>} : memref<72x384xf32, #tpu.memory_space<vmem>>, vector<8x384xf32>,
    %c0_266 = arith.constant 0 : index
    %c19_267 = arith.constant 19 : index
    %203 = vector.load %arg24[%c0_266, %c19_267] : memref<8x422xf32, #tpu.memory_space<vmem>>, vector<8x384xf32>
    %c32_268 = arith.constant 32 : index
    %c0_269 = arith.constant 0 : index
    %204 = vector.load %arg25[%c32_268, %c0_269] : memref<72x384xf32, #tpu.memory_space<vmem>>, vector<8x384xf32>
    tpu.vector_store %arg25[%c32_268, %c0_269], %203 {strides = array<i32>} : memref<72x384xf32, #tpu.memory_space<vmem>>, vector<8x384xf32>,
    %c0_270 = arith.constant 0 : index
    %c20_271 = arith.constant 20 : index
    %205 = vector.load %arg24[%c0_270, %c20_271] : memref<8x422xf32, #tpu.memory_space<vmem>>, vector<8x384xf32>
    %c40_272 = arith.constant 40 : index
    %c0_273 = arith.constant 0 : index
    %206 = vector.load %arg25[%c40_272, %c0_273] : memref<72x384xf32, #tpu.memory_space<vmem>>, vector<8x384xf32>
    tpu.vector_store %arg25[%c40_272, %c0_273], %205 {strides = array<i32>} : memref<72x384xf32, #tpu.memory_space<vmem>>, vector<8x384xf32>,
    %c0_274 = arith.constant 0 : index
    %c36_275 = arith.constant 36 : index
    %207 = vector.load %arg24[%c0_274, %c36_275] : memref<8x422xf32, #tpu.memory_space<vmem>>, vector<8x384xf32>
    %c48_276 = arith.constant 48 : index
    %c0_277 = arith.constant 0 : index
    %208 = vector.load %arg25[%c48_276, %c0_277] : memref<72x384xf32, #tpu.memory_space<vmem>>, vector<8x384xf32>
    tpu.vector_store %arg25[%c48_276, %c0_277], %207 {strides = array<i32>} : memref<72x384xf32, #tpu.memory_space<vmem>>, vector<8x384xf32>,
    %c0_278 = arith.constant 0 : index
    %c37_279 = arith.constant 37 : index
    %209 = vector.load %arg24[%c0_278, %c37_279] : memref<8x422xf32, #tpu.memory_space<vmem>>, vector<8x384xf32>
    %c56_280 = arith.constant 56 : index
    %c0_281 = arith.constant 0 : index
    %210 = vector.load %arg25[%c56_280, %c0_281] : memref<72x384xf32, #tpu.memory_space<vmem>>, vector<8x384xf32>
    tpu.vector_store %arg25[%c56_280, %c0_281], %209 {strides = array<i32>} : memref<72x384xf32, #tpu.memory_space<vmem>>, vector<8x384xf32>,
    %c0_282 = arith.constant 0 : index
    %c38_283 = arith.constant 38 : index
    %211 = vector.load %arg24[%c0_282, %c38_283] : memref<8x422xf32, #tpu.memory_space<vmem>>, vector<8x384xf32>
    %c64_284 = arith.constant 64 : index
    %c0_285 = arith.constant 0 : index
    %212 = vector.load %arg25[%c64_284, %c0_285] : memref<72x384xf32, #tpu.memory_space<vmem>>, vector<8x384xf32>
    tpu.vector_store %arg25[%c64_284, %c0_285], %211 {strides = array<i32>} : memref<72x384xf32, #tpu.memory_space<vmem>>, vector<8x384xf32>,
    %c0_286 = arith.constant 0 : index
    %c0_287 = arith.constant 0 : index
    %213 = vector.load %arg25[%c0_286, %c0_287] : memref<72x384xf32, #tpu.memory_space<vmem>>, vector<72x384xf32>
    %cst_288 = arith.constant dense<0.000000e+00> : vector<9x384xf32>
    %214 = tpu.matmul %11, %213, %cst_288 {dimension_numbers = #tpu.dot_dimension_numbers<[1], [0], [0], [1], [0, 0, 1, 1], [], []>} : vector<9x72xf32>, vector<72x384xf32>, vector<9x384xf32> -> vector<9x384xf32>
    %cst_289 = arith.constant 0.000000e+00 : f32
    %215 = vector.shape_cast %22 : vector<1x384xi1> to vector<1x384xi1>
    %216 = vector.broadcast %215 : vector<1x384xi1> to vector<9x384xi1>
    %217 = vector.broadcast %cst_289 : f32 to vector<9x384xf32>
    %218 = arith.select %216, %214, %217 : vector<9x384xi1>, vector<9x384xf32>
    %c0_290 = arith.constant 0 : index
    %c0_291 = arith.constant 0 : index
    %c0_292 = arith.constant 0 : index
    %219 = vector.load %arg17[%c0_290, %c0_291, %c0_292] : memref<1x9x384xf32, #tpu.memory_space<vmem>>, vector<1x9x384xf32>
    %220 = vector.shape_cast %219 : vector<1x9x384xf32> to vector<9x384xf32>
    %221 = vector.shape_cast %218 : vector<9x384xf32> to vector<1x9x384xf32>
    tpu.vector_store %arg17[%c0_290, %c0_291, %c0_292], %221 {strides = array<i32>} : memref<1x9x384xf32, #tpu.memory_space<vmem>>, vector<1x9x384xf32>,
    return
  }
  func.func @transform_0(%arg0: i32) -> (i32, i32, i32) {
    %c0_i32 = arith.constant 0 : i32
    %c0_i32_0 = arith.constant 0 : i32
    %c0_i32_1 = arith.constant 0 : i32
    return %arg0, %c0_i32, %c0_i32_0 : i32, i32, i32
  }
  func.func @transform_1(%arg0: i32) -> (i32, i32, i32) {
    %c0_i32 = arith.constant 0 : i32
    %c0_i32_0 = arith.constant 0 : i32
    %c0_i32_1 = arith.constant 0 : i32
    return %arg0, %c0_i32, %c0_i32_0 : i32, i32, i32
  }
  func.func @transform_2(%arg0: i32) -> (i32, i32, i32) {
    %c0_i32 = arith.constant 0 : i32
    %c0_i32_0 = arith.constant 0 : i32
    %c0_i32_1 = arith.constant 0 : i32
    return %arg0, %c0_i32, %c0_i32_0 : i32, i32, i32
  }
  func.func @transform_3(%arg0: i32) -> (i32, i32) {
    %c0_i32 = arith.constant 0 : i32
    %c0_i32_0 = arith.constant 0 : i32
    %c0_i32_1 = arith.constant 0 : i32
    return %c0_i32, %c0_i32_0 : i32, i32
  }
  func.func @transform_4(%arg0: i32) -> (i32, i32) {
    %c0_i32 = arith.constant 0 : i32
    %c0_i32_0 = arith.constant 0 : i32
    %c0_i32_1 = arith.constant 0 : i32
    return %c0_i32, %c0_i32_0 : i32, i32
  }
  func.func @transform_5(%arg0: i32) -> (i32, i32) {
    %c0_i32 = arith.constant 0 : i32
    %c0_i32_0 = arith.constant 0 : i32
    %c0_i32_1 = arith.constant 0 : i32
    return %c0_i32, %c0_i32_0 : i32, i32
  }
  func.func @transform_6(%arg0: i32) -> (i32, i32) {
    %c0_i32 = arith.constant 0 : i32
    %c0_i32_0 = arith.constant 0 : i32
    %c0_i32_1 = arith.constant 0 : i32
    return %c0_i32, %c0_i32_0 : i32, i32
  }
  func.func @transform_7(%arg0: i32) -> (i32, i32) {
    %c0_i32 = arith.constant 0 : i32
    %c0_i32_0 = arith.constant 0 : i32
    %c0_i32_1 = arith.constant 0 : i32
    return %c0_i32, %c0_i32_0 : i32, i32
  }
  func.func @transform_8(%arg0: i32) -> (i32, i32) {
    %c0_i32 = arith.constant 0 : i32
    %c0_i32_0 = arith.constant 0 : i32
    %c0_i32_1 = arith.constant 0 : i32
    return %c0_i32, %c0_i32_0 : i32, i32
  }
  func.func @transform_9(%arg0: i32) -> (i32, i32) {
    %c0_i32 = arith.constant 0 : i32
    %c0_i32_0 = arith.constant 0 : i32
    %c0_i32_1 = arith.constant 0 : i32
    return %c0_i32, %c0_i32_0 : i32, i32
  }
  func.func @transform_10(%arg0: i32) -> (i32, i32) {
    %c0_i32 = arith.constant 0 : i32
    %c0_i32_0 = arith.constant 0 : i32
    %c0_i32_1 = arith.constant 0 : i32
    return %c0_i32, %c0_i32_0 : i32, i32
  }
  func.func @transform_11(%arg0: i32) -> (i32, i32) {
    %c0_i32 = arith.constant 0 : i32
    %c0_i32_0 = arith.constant 0 : i32
    %c0_i32_1 = arith.constant 0 : i32
    return %c0_i32, %c0_i32_0 : i32, i32
  }
  func.func @transform_12(%arg0: i32) -> (i32, i32) {
    %c0_i32 = arith.constant 0 : i32
    %c0_i32_0 = arith.constant 0 : i32
    %c0_i32_1 = arith.constant 0 : i32
    return %c0_i32, %c0_i32_0 : i32, i32
  }
  func.func @transform_13(%arg0: i32) -> (i32, i32) {
    %c0_i32 = arith.constant 0 : i32
    %c0_i32_0 = arith.constant 0 : i32
    %c0_i32_1 = arith.constant 0 : i32
    return %c0_i32, %c0_i32_0 : i32, i32
  }
  func.func @transform_14(%arg0: i32) -> (i32, i32, i32) {
    %c0_i32 = arith.constant 0 : i32
    %c0_i32_0 = arith.constant 0 : i32
    %c0_i32_1 = arith.constant 0 : i32
    return %arg0, %c0_i32, %c0_i32_0 : i32, i32, i32
  }
  func.func @transform_15(%arg0: i32) -> (i32, i32, i32) {
    %c0_i32 = arith.constant 0 : i32
    %c0_i32_0 = arith.constant 0 : i32
    %c0_i32_1 = arith.constant 0 : i32
    return %arg0, %c0_i32, %c0_i32_0 : i32, i32, i32
  }
  func.func @transform_16(%arg0: i32) -> (i32, i32, i32) {
    %c0_i32 = arith.constant 0 : i32
    %c0_i32_0 = arith.constant 0 : i32
    %c0_i32_1 = arith.constant 0 : i32
    return %arg0, %c0_i32, %c0_i32_0 : i32, i32, i32
  }
  func.func @transform_17(%arg0: i32) -> (i32, i32, i32) {
    %c0_i32 = arith.constant 0 : i32
    %c0_i32_0 = arith.constant 0 : i32
    %c0_i32_1 = arith.constant 0 : i32
    return %arg0, %c0_i32, %c0_i32_0 : i32, i32, i32
  }
  func.func @transform_18(%arg0: i32) -> (i32, i32, i32) {
    %c0_i32 = arith.constant 0 : i32
    %c0_i32_0 = arith.constant 0 : i32
    %c0_i32_1 = arith.constant 0 : i32
    return %arg0, %c0_i32, %c0_i32_0 : i32, i32, i32
  }
}

</mosaic_0001>

<bundles_post_ra>
// kernel: forward.1
= control target key start
LH: loop header
LB: loop body
LE: loop exit
PB: predicated region body
PF: predicated region fallthrough
CT: control target
= control target key end

     0   :  { %s3469_s27 = smov 0   ;;  %s4387_s0 = inlined_call_operand.vmem [shape: f32[2,16,128], index: 0, kind: input, shape index: {}]   ;;  %s4388_s1 = inlined_call_operand.vmem [shape: f32[2,8,128], index: 1, kind: input, shape index: {}]   ;;  %s4389_s2 = inlined_call_operand.vmem [shape: f32[2,8,384], index: 2, kind: input, shape index: {}]   ;;  %s4390_s3 = inlined_call_operand.vmem [shape: f32[16,144], index: 3, kind: input, shape index: {}]   ;;  %s4391_s4 = inlined_call_operand.vmem [shape: f32[2,144], index: 4, kind: input, shape index: {}]   ;;  %s4392_s5 = inlined_call_operand.vmem [shape: f32[8,72], index: 5, kind: input, shape index: {}]   ;;  %s4393_s6 = inlined_call_operand.vmem [shape: f32[2,72], index: 6, kind: input, shape index: {}]   ;;  %s4394_s7 = inlined_call_operand.vmem [shape: f32[8,72], index: 7, kind: input, shape index: {}]   ;;  %s4395_s8 = inlined_call_operand.vmem [shape: f32[9,72], index: 8, kind: input, shape index: {}]   ;;  %s4396_s9 = inlined_call_operand.vmem [shape: f32[128,128], index: 9, kind: input, shape index: {}]   ;;  %s4397_s10 = inlined_call_operand.vmem [shape: f32[128,384], index: 10, kind: input, shape index: {}]   ;;  %s4398_s11 = inlined_call_operand.vmem [shape: f32[1,128], index: 11, kind: input, shape index: {}]   ;;  %s4399_s12 = inlined_call_operand.vmem [shape: f32[1,128], index: 12, kind: input, shape index: {}]   ;;  %s4400_s13 = inlined_call_operand.vmem [shape: f32[1,384], index: 13, kind: input, shape index: {}]   ;;  %s4401_s14 = inlined_call_operand.vmem [shape: f32[2,2,128], index: 14, kind: output, shape index: {0}]   ;;  %s4402_s15 = inlined_call_operand.vmem [shape: f32[2,2,128], index: 15, kind: output, shape index: {1}]   ;;  %s4403_s16 = inlined_call_operand.vmem [shape: f32[2,9,384], index: 16, kind: output, shape index: {2}]   ;;  %s4404_s17 = inlined_call_operand.vmem [shape: f32[2,1,128], index: 17, kind: output, shape index: {3}]   ;;  %s4405_s18 = inlined_call_operand.vmem [shape: f32[2,1,384], index: 18, kind: output, shape index: {4}]  }
   0x1   :  { %4411 = sst [smem:[#allocation8_spill]] %s4387_s0 }
   0x2   :  { %4412 = sst [smem:[#allocation9_spill]] %s4388_s1 }
   0x3   :  { %4413 = sst [smem:[#allocation10_spill]] %s4389_s2 }
   0x4 LB: > { %s3049_s28 = sadd.s32 4294967295, %s3347_s27   ;;  %p3053_p0 = scmp.ge.s32.totalorder %s3347_s27, 1  ;;  %s3347_s27 = sphi %s3469_s27, %s29_s27  }
   0x5   : > { %p540_p1 = scmp.lt.s32.totalorder %s3347_s27, 3 }
   0x7   : > { %p541_p2 = pnand %p3053_p0, %p540_p1 }
   0x8   : > { %p618_p3 = scmp.lt.s32.totalorder (!%p541_p2), %s3049_s28, 1  ;;  %s4414_s19 = sld [smem:[#allocation8_spill]] (!%p541_p2) }
   0x9   : > { %544 = sbr.rel (%p541_p2) target bundleno = 3351 (0xd17), region = 76  ;;  %s3350_s20 = smov (!%p541_p2), 7  }
   0xa   : > { %s3351_s21 = smov (!%p541_p2), 115   ;;  %s3352_s22 = smov (!%p541_p2), 116  }
   0xb   : > { %s3353_s2 = smov (!%p541_p2), 120   ;;  %s3354_s23 = smov (!%p541_p2), 121  }
   0xc   : > { %s3355_s24 = smov (!%p541_p2), 122   ;;  %s3356_s25 = smov (!%p541_p2), 126  }
   0xd   : > { %s4408_s26 = smov (!%p541_p2), 127   ;;  %s4406_s0 = smov (!%p541_p2), 114  }
   0xe   : > { %vm738_vm0 = vcmask 56320   ;;  %vm741_vm1 = vcmask 113720   ;;  %v3349_v0 = vmov 0.0   ;;  %s4427_s28 = smov (!%p618_p3, %s3049_s28), 1  ;;  %vm760_vm2 = vcmask 1047608   ;;  %v659_v9 = vld [vmem:[%s4390_s3 + $0x8] sm:$0xff] }
   0xf   : > { %740 = vst.msk [vmem:[#allocation2 + $0x10] sm:$0xff] %vm738_vm0, %v3349_v0  ;;  %739 = vst.msk [vmem:[#allocation2] sm:$0xff] %vm738_vm0, %v3349_v0  ;;  %978 = vmatprep.subr.mxu0 %v3349_v0  ;;  %1283 = vmatprep.subr.mxu1 %v3349_v0  ;;  %s3075_s29 = sshll.u32 %s4427_s28, 4  ;;  %vm971_vm3 = vcmask 130048   ;;  %vm923_vm4 = vcmask 941056   ;;  %vm900_vm5 = vcmask 949248   ;;  %v1054_v61 = vlaneseq  ;;  %s647_s30 = scalar_lea.vmem %s4404_s17, %s4427_s28 }
  0x10   : > { %743 = vst.msk [vmem:[#allocation2 + $0x18] sm:$0xff] %vm741_vm1, %v3349_v0  ;;  %742 = vst.msk [vmem:[#allocation2 + $0x8] sm:$0xff] %vm741_vm1, %v3349_v0  ;;  %s622_s1 = scalar_lea.vmem %s4414_s19, %s3075_s29  ;;  %3061 = vmatprep.mubr.msk.f32.mxu0 %vm971_vm3, %v659_v9  ;;  %vm877_vm6 = vcmask 982016   ;;  %vm854_vm7 = vcmask 990208   ;;  %vm831_vm8 = vcmask 998400   ;;  %vm808_vm9 = vcmask 1031168  }
  0x11   : > { %v653_v1 = vld [vmem:[%s622_s1 + $0x8] sm:$0xff]  ;;  %v652_v2 = vld [vmem:[%s622_s1] sm:$0xff]  ;;  %vm785_vm10 = vcmask 1039360   ;;  %vm946_vm11 = vcmask 932864   ;;  %v661_v59 = vld [vmem:[%s4390_s3 + $0x18] sm:$0xff]  ;;  %v3603_v63 = vshrl.u32 %v1054_v61, 7 }
  0x12   : > { %756 = vrot.lane.b32.xlu0 %v653_v1, %s3350_s20  ;;  %v658_v57 = vld [vmem:[%s4390_s3] sm:$0xff]  ;;  %v660_v60 = vld [vmem:[%s4390_s3 + $0x10] sm:$0xff]  ;;  %vm3360_vm14 = vmmov 0   ;;  %vm746_vm1 = vcmask 179288   ;;  %s3056_s1 = sshll.u32 %s4427_s28, 3  ;;  %s3307_s29 = smul.u32 3, %s4427_s28 }
  0x13   : > { %v732_v62 = vld [vmem:[%s4398_s11] sm:$0x1]  ;;  %v3606_v1 = vsub.s32 0, %v3603_v63  ;;  %747 = vst.msk [vmem:[#allocation4 + $0x8] sm:$0xff] %vm746_vm1, %v3349_v0  ;;  %vm2024_vm1 = vcmask 1047704  }
  0x14   : > { %vm733_vm12 = vcmp.ne.f32.partialorder %v732_v62, 0.0 }
  0x16   : > { %754 = vrot.lane.b32.xlu0 %v652_v2, %s3350_s20  ;;  %v3359_v2 = vmov 0  }
  0x84   : > { %v757_v3 = vpop.permute.xlu0 %756 }
  0x85   : > { %763 = vst.msk [vmem:[#allocation2 + $0x10] sm:$0xff] %vm760_vm2, %v757_v3 }
  0x86   : > { %764 = vst.msk [vmem:[#allocation2 + $0x18] sm:$0xff] %vm738_vm0, %v757_v3  ;;  %v1053_v3 = vsel %vm733_vm12, 1, %v3359_v2 }
  0x88   : > { %v755_v4 = vpop.permute.xlu0 %754 }
  0x89   : > { %761 = vst.msk [vmem:[#allocation2] sm:$0xff] %vm760_vm2, %v755_v4 }
  0x8a   : > { %762 = vst.msk [vmem:[#allocation2 + $0x8] sm:$0xff] %vm738_vm0, %v755_v4  ;;  %v1057_v4 = vrot.slane %v1053_v3, %v3606_v1 }
  0x8c   : > { %v3497_v5 = vld [vmem:[#allocation2 + $0x10] sm:$0xff]  ;;  %vm3610_vm13 = vcmp.eq.s32.totalorder %v1057_v4, 1 }
  0x8d   : > { %919 = vrot.lane.b32.xlu1 %v3497_v5, %s3351_s21  ;;  %v910_v6 = vld [vmem:[#allocation2 + $0x18] sm:$0xff] }
  0x90   : > { %v3501_v7 = vld [vmem:[#allocation2] sm:$0xff] }
  0x91   : > { %921 = vrot.lane.b32.xlu1 %v910_v6, %s3351_s21  ;;  %915 = vrot.lane.b32.xlu0 %v3501_v7, %s3351_s21  ;;  %v908_v8 = vld [vmem:[#allocation2 + $0x8] sm:$0xff] }
  0x95   : > { %917 = vrot.lane.b32.xlu1 %v908_v8, %s3351_s21  ;;  %896 = vrot.lane.b32.xlu0 %v3497_v5, %s3352_s22 }
  0x99   : > { %898 = vrot.lane.b32.xlu1 %v910_v6, %s3352_s22  ;;  %892 = vrot.lane.b32.xlu0 %v3501_v7, %s3352_s22 }
  0x9d   : > { %894 = vrot.lane.b32.xlu1 %v908_v8, %s3352_s22  ;;  %873 = vrot.lane.b32.xlu0 %v3497_v5, %s3353_s2 }
  0xa1   : > { %875 = vrot.lane.b32.xlu1 %v910_v6, %s3353_s2  ;;  %869 = vrot.lane.b32.xlu0 %v3501_v7, %s3353_s2 }
  0xa5   : > { %871 = vrot.lane.b32.xlu1 %v908_v8, %s3353_s2  ;;  %850 = vrot.lane.b32.xlu0 %v3497_v5, %s3354_s23 }
  0xa9   : > { %852 = vrot.lane.b32.xlu1 %v910_v6, %s3354_s23  ;;  %846 = vrot.lane.b32.xlu0 %v3501_v7, %s3354_s23 }
  0xad   : > { %848 = vrot.lane.b32.xlu1 %v908_v8, %s3354_s23  ;;  %827 = vrot.lane.b32.xlu0 %v3497_v5, %s3355_s24 }
  0xb1   : > { %829 = vrot.lane.b32.xlu1 %v910_v6, %s3355_s24  ;;  %823 = vrot.lane.b32.xlu0 %v3501_v7, %s3355_s24 }
  0xb5   : > { %825 = vrot.lane.b32.xlu1 %v908_v8, %s3355_s24  ;;  %804 = vrot.lane.b32.xlu0 %v3497_v5, %s3356_s25 }
  0xb9   : > { %806 = vrot.lane.b32.xlu1 %v910_v6, %s3356_s25  ;;  %800 = vrot.lane.b32.xlu0 %v3501_v7, %s3356_s25 }
  0xbd   : > { %802 = vrot.lane.b32.xlu1 %v908_v8, %s3356_s25  ;;  %781 = vrot.lane.b32.xlu0 %v3497_v5, %s4408_s26 }
  0xc1   : > { %783 = vrot.lane.b32.xlu1 %v910_v6, %s4408_s26  ;;  %777 = vrot.lane.b32.xlu0 %v3501_v7, %s4408_s26 }
  0xc5   : > { %779 = vrot.lane.b32.xlu1 %v908_v8, %s4408_s26  ;;  %942 = vrot.lane.b32.xlu0 %v3497_v5, %s4406_s0  ;;  %s3371_s26 = smov 92  }
  0xc9   : > { %944 = vrot.lane.b32.xlu1 %v910_v6, %s4406_s0  ;;  %938 = vrot.lane.b32.xlu0 %v3501_v7, %s4406_s0 }
  0xcd   : > { %940 = vrot.lane.b32.xlu1 %v908_v8, %s4406_s0  ;;  %s4410_s0 = sshll.u32 %s4427_s28, 1 }
  0xce   : > { %s635_s19 = scalar_lea.vmem %s4401_s14, %s4410_s0 }
  0xff   : > { %v920_v10 = vpop.permute.xlu1 %919 }
 0x103   : > { %v922_v11 = vpop.permute.xlu1 %921  ;;  %v916_v12 = vpop.permute.xlu0 %915 }
 0x104   : > { %v925_v13 = vsel %vm923_vm4, %v920_v10, %v922_v11 }
 0x105   : > { %979 = vmatpush1.msra.mxu0 %v925_v13 }
 0x106   : > { %980 = vmatprep.subr.mxu0 %v3349_v0 }
 0x107   : > { %v918_v14 = vpop.permute.xlu1 %917  ;;  %v897_v15 = vpop.permute.xlu0 %896 }
 0x108   : > { %v924_v16 = vsel %vm923_vm4, %v916_v12, %v918_v14 }
 0x109   : > { %981 = vmatpush1.msra.mxu0 %v924_v16 }
 0x10a   : > { %982 = vmatprep.subr.mxu0 %v3349_v0 }
 0x10b   : > { %v899_v17 = vpop.permute.xlu1 %898  ;;  %v893_v18 = vpop.permute.xlu0 %892 }
 0x10c   : > { %v902_v19 = vsel %vm900_vm5, %v897_v15, %v899_v17 }
 0x10d   : > { %983 = vmatpush1.msra.mxu0 %v902_v19 }
 0x10e   : > { %984 = vmatprep.subr.mxu0 %v3349_v0 }
 0x10f   : > { %v895_v20 = vpop.permute.xlu1 %894  ;;  %v874_v21 = vpop.permute.xlu0 %873 }
 0x110   : > { %v901_v22 = vsel %vm900_vm5, %v893_v18, %v895_v20  ;;  %v3667_v18 = vld.sshfl [vmem:[%s4391_s4] sm:$0x33 pattern:$0x76325410]  ;;  %v683_v20 = vld [vmem:[%s4396_s9 + $0x78] sm:$0xff] }
 0x111   : > { %985 = vmatpush1.msra.mxu0 %v901_v22  ;;  %v1279_v19 = vcombine.high %v3667_v18, %v3667_v18  ;;  %v681_v22 = vld [vmem:[%s4396_s9 + $0x68] sm:$0xff] }
 0x112   : > { %986 = vmatprep.subr.mxu0 %v3349_v0 }
 0x113   : > { %v876_v23 = vpop.permute.xlu1 %875  ;;  %v870_v24 = vpop.permute.xlu0 %869  ;;  %3064 = vmatprep.mubr.msk.f32.mxu1 %vm971_vm3, %v1279_v19 }
 0x114   : > { %v879_v25 = vsel %vm877_vm6, %v874_v21, %v876_v23  ;;  %v682_v21 = vld [vmem:[%s4396_s9 + $0x70] sm:$0xff]  ;;  %v680_v23 = vld [vmem:[%s4396_s9 + $0x60] sm:$0xff] }
 0x115   : > { %987 = vmatpush1.msra.mxu0 %v879_v25  ;;  %v678_v25 = vld [vmem:[%s4396_s9 + $0x50] sm:$0xff] }
 0x116   : > { %988 = vmatprep.subr.mxu0 %v3349_v0 }
 0x117   : > { %v872_v26 = vpop.permute.xlu1 %871  ;;  %v851_v27 = vpop.permute.xlu0 %850 }
 0x118   : > { %v878_v28 = vsel %vm877_vm6, %v870_v24, %v872_v26  ;;  %v679_v24 = vld [vmem:[%s4396_s9 + $0x58] sm:$0xff]  ;;  %v677_v26 = vld [vmem:[%s4396_s9 + $0x48] sm:$0xff] }
 0x119   : > { %989 = vmatpush1.msra.mxu0 %v878_v28  ;;  %v675_v28 = vld [vmem:[%s4396_s9 + $0x38] sm:$0xff] }
 0x11a   : > { %990 = vmatprep.subr.mxu0 %v3349_v0 }
 0x11b   : > { %v853_v29 = vpop.permute.xlu1 %852  ;;  %v847_v30 = vpop.permute.xlu0 %846 }
 0x11c   : > { %v856_v31 = vsel %vm854_vm7, %v851_v27, %v853_v29  ;;  %v676_v27 = vld [vmem:[%s4396_s9 + $0x40] sm:$0xff]  ;;  %v674_v29 = vld [vmem:[%s4396_s9 + $0x30] sm:$0xff] }
 0x11d   : > { %991 = vmatpush1.msra.mxu0 %v856_v31 }
 0x11e   : > { %992 = vmatprep.subr.mxu0 %v3349_v0 }
 0x11f   : > { %v849_v32 = vpop.permute.xlu1 %848  ;;  %v828_v33 = vpop.permute.xlu0 %827 }
 0x120   : > { %v855_v34 = vsel %vm854_vm7, %v847_v30, %v849_v32  ;;  %v673_v30 = vld [vmem:[%s4396_s9 + $0x28] sm:$0xff] }
 0x121   : > { %993 = vmatpush1.msra.mxu0 %v855_v34 }
 0x122   : > { %994 = vmatprep.subr.mxu0 %v3349_v0 }
 0x123   : > { %v830_v35 = vpop.permute.xlu1 %829  ;;  %v824_v36 = vpop.permute.xlu0 %823 }
 0x124   : > { %v833_v37 = vsel %vm831_vm8, %v828_v33, %v830_v35 }
 0x125   : > { %995 = vmatpush1.msra.mxu0 %v833_v37 }
 0x126   : > { %996 = vmatprep.subr.mxu0 %v3349_v0 }
 0x127   : > { %v826_v38 = vpop.permute.xlu1 %825  ;;  %v805_v39 = vpop.permute.xlu0 %804 }
 0x128   : > { %v832_v40 = vsel %vm831_vm8, %v824_v36, %v826_v38 }
 0x129   : > { %997 = vmatpush1.msra.mxu0 %v832_v40 }
 0x12a   : > { %998 = vmatprep.subr.mxu0 %v3349_v0 }
 0x12b   : > { %v807_v41 = vpop.permute.xlu1 %806  ;;  %v801_v42 = vpop.permute.xlu0 %800 }
 0x12c   : > { %v810_v43 = vsel %vm808_vm9, %v805_v39, %v807_v41 }
 0x12d   : > { %999 = vmatpush1.msra.mxu0 %v810_v43 }
 0x12e   : > { %1000 = vmatprep.subr.mxu0 %v3349_v0 }
 0x12f   : > { %v803_v44 = vpop.permute.xlu1 %802  ;;  %v782_v45 = vpop.permute.xlu0 %781 }
 0x130   : > { %v809_v46 = vsel %vm808_vm9, %v801_v42, %v803_v44 }
 0x131   : > { %1001 = vmatpush1.msra.mxu0 %v809_v46 }
 0x132   : > { %1002 = vmatprep.subr.mxu0 %v3349_v0 }
 0x133   : > { %v784_v47 = vpop.permute.xlu1 %783  ;;  %v778_v48 = vpop.permute.xlu0 %777 }
 0x134   : > { %v787_v49 = vsel %vm785_vm10, %v782_v45, %v784_v47 }
 0x135   : > { %1003 = vmatpush1.msra.mxu0 %v787_v49 }
 0x136   : > { %1004 = vmatprep.subr.mxu0 %v3349_v0 }
 0x137   : > { %v780_v50 = vpop.permute.xlu1 %779  ;;  %v943_v52 = vpop.permute.xlu0 %942 }
 0x138   : > { %v786_v51 = vsel %vm785_vm10, %v778_v48, %v780_v50 }
 0x139   : > { %1005 = vmatpush1.msra.mxu0 %v786_v51 }
 0x13a   : > { %1006 = vmatprep.subr.mxu0 %v3349_v0 }
 0x13b   : > { %v945_v53 = vpop.permute.xlu1 %944  ;;  %1007 = vmatpush1.msra.mxu0 %v3497_v5  ;;  %v939_v55 = vpop.permute.xlu0 %938 }
 0x13c   : > { %1008 = vmatprep.subr.mxu0 %v3349_v0  ;;  %v948_v54 = vsel %vm946_vm11, %v943_v52, %v945_v53 }
 0x13d   : > { %1009 = vmatpush1.msra.mxu0 %v3501_v7 }
 0x13e   : > { %1038 = vmatprep.subr.mxu0 %v3349_v0 }
 0x13f   : > { %v941_v56 = vpop.permute.xlu1 %940  ;;  %1039 = vmatpush2.msra.mxu0 %v948_v54 }
 0x140   : > { %1040 = vmatprep.subr.mxu0 %v3349_v0  ;;  %v947_v58 = vsel %vm946_vm11, %v939_v55, %v941_v56 }
 0x141   : > { %1041 = vmatpush2.msra.mxu0 %v947_v58 }
 0x142   : > { %1043 = vmatmul.mubr.f32.vlgmr.msra.gmra.mxu0 %v658_v57  ;;  %3151 = vmatprep.subr.mxu0 %v3349_v0 }
 0x143   : > { %3062 = vmatprep.mubr.msk.f32.mxu0 %vm971_vm3, %v661_v59  ;;  %3152 = vmatpush3.msra.mxu0 %v683_v20  ;;  %vm1538_vm3 = vcmask 867328  }
 0x144   : > { %3153 = vmatprep.subr.mxu0 %v3349_v0 }
 0x145   : > { %3154 = vmatpush3.msra.mxu0 %v682_v21 }
 0x146   : > { %1048 = vmatmul.mubr.f32.gmra.mxu0 %v660_v60  ;;  %3155 = vmatprep.subr.mxu0 %v3349_v0 }
 0x147   : > { %3156 = vmatpush3.msra.mxu0 %v681_v22  ;;  %3183 = vmatprep.mubr.msk.f32.mxu0 %vm3360_vm14, %v3349_v0 }
 0x148   : > { %3157 = vmatprep.subr.mxu0 %v3349_v0 }
 0x149   : > { %3158 = vmatpush3.msra.mxu0 %v680_v23 }
 0x14a   : > { %3159 = vmatprep.subr.mxu0 %v3349_v0 }
 0x14b   : > { %3160 = vmatpush3.msra.mxu0 %v679_v24  ;;  %v669_v24 = vld [vmem:[%s4396_s9 + $0x8] sm:$0xff] }
 0x14c   : > { %3161 = vmatprep.subr.mxu0 %v3349_v0 }
 0x14d   : > { %3162 = vmatpush3.msra.mxu0 %v678_v25  ;;  %v668_v25 = vld [vmem:[%s4396_s9] sm:$0xff] }
 0x14e   : > { %3163 = vmatprep.subr.mxu0 %v3349_v0 }
 0x14f   : > { %3164 = vmatpush3.msra.mxu0 %v677_v26 }
 0x150   : > { %3165 = vmatprep.subr.mxu0 %v3349_v0 }
 0x151   : > { %3166 = vmatpush3.msra.mxu0 %v676_v27 }
 0x152   : > { %3167 = vmatprep.subr.mxu0 %v3349_v0 }
 0x153   : > { %3168 = vmatpush3.msra.mxu0 %v675_v28 }
 0x154   : > { %3169 = vmatprep.subr.mxu0 %v3349_v0 }
 0x155   : > { %3170 = vmatpush3.msra.mxu0 %v674_v29 }
 0x156   : > { %3171 = vmatprep.subr.mxu0 %v3349_v0 }
 0x157   : > { %3172 = vmatpush3.msra.mxu0 %v673_v30 }
 0x158   : > { %3173 = vmatprep.subr.mxu0 %v3349_v0 }
 0x202   : > { %v1044_v6 = vpop.f32.mrf.mxu0 }
 0x203   : > { %v1059_v7 = vsel %vm3610_vm13, %v1044_v6, 0.0 }
 0x204   : > { %1063 = vrot.lane.b32.xlu1 %v1059_v7, %s3350_s20  ;;  %v1046_v8 = vpop.f32.mrf.mxu0 }
 0x206   : > { %v1049_v9 = vpop.f32.mrf.mxu0 }
 0x207   : > { %v1060_v10 = vsel %vm3610_vm13, %v1049_v9, 0.0 }
 0x208   : > { %v1051_v11 = vpop.f32.mrf.mxu0  ;;  %1065 = vrot.lane.b32.xlu0 %v1060_v10, %s3350_s20  ;;  %s4418_s20 = smov 114  }
 0x276   : > { %v1064_v12 = vpop.permute.xlu1 %1063 }
 0x277   : > { %1070 = vst.msk [vmem:[#allocation2 + $0x8] sm:$0xff] %vm738_vm0, %v1064_v12 }
 0x278   : > { %1069 = vst.msk [vmem:[#allocation2] sm:$0xff] %vm760_vm2, %v1064_v12 }
 0x27a   : > { %v1066_v13 = vpop.permute.xlu0 %1065 }
 0x27b   : > { %1072 = vst.msk [vmem:[#allocation2 + $0x18] sm:$0xff] %vm738_vm0, %v1066_v13  ;;  %vm744_vm0 = vcmask 89088  }
 0x27c   : > { %1071 = vst.msk [vmem:[#allocation2 + $0x10] sm:$0xff] %vm760_vm2, %v1066_v13  ;;  %vm1444_vm2 = vcmask 1047640  }
 0x27d   : > { %745 = vst.msk [vmem:[#allocation4] sm:$0xff] %vm744_vm0, %v3349_v0 }
 0x27e   : > { %v1210_v14 = vld [vmem:[#allocation2 + $0x8] sm:$0xff] }
 0x27f   : > { %v3624_v15 = vld [vmem:[#allocation2] sm:$0xff]  ;;  %1219 = vrot.lane.b32.xlu1 %v1210_v14, %s3351_s21 }
 0x280   : > { %1217 = vrot.lane.b32.xlu0 %v3624_v15, %s3351_s21 }
 0x282   : > { %v1212_v16 = vld [vmem:[#allocation2 + $0x18] sm:$0xff] }
 0x283   : > { %1197 = vrot.lane.b32.xlu1 %v1210_v14, %s3352_s22  ;;  %v3644_v17 = vld [vmem:[#allocation2 + $0x10] sm:$0xff] }
 0x284   : > { %1195 = vrot.lane.b32.xlu0 %v3624_v15, %s3352_s22 }
 0x287   : > { %1175 = vrot.lane.b32.xlu1 %v1210_v14, %s3353_s2 }
 0x288   : > { %1173 = vrot.lane.b32.xlu0 %v3624_v15, %s3353_s2 }
 0x28b   : > { %1153 = vrot.lane.b32.xlu1 %v1210_v14, %s3354_s23 }
 0x28c   : > { %1151 = vrot.lane.b32.xlu0 %v3624_v15, %s3354_s23 }
 0x28f   : > { %1131 = vrot.lane.b32.xlu1 %v1210_v14, %s3355_s24 }
 0x290   : > { %1129 = vrot.lane.b32.xlu0 %v3624_v15, %s3355_s24 }
 0x293   : > { %1109 = vrot.lane.b32.xlu1 %v1210_v14, %s3356_s25 }
 0x294   : > { %1107 = vrot.lane.b32.xlu0 %v3624_v15, %s3356_s25 }
 0x297   : > { %1223 = vrot.lane.b32.xlu1 %v1212_v16, %s3351_s21 }
 0x298   : > { %1221 = vrot.lane.b32.xlu0 %v3644_v17, %s3351_s21  ;;  %s3364_s21 = smov 108  }
 0x29b   : > { %1201 = vrot.lane.b32.xlu1 %v1212_v16, %s3352_s22 }
 0x29c   : > { %1199 = vrot.lane.b32.xlu0 %v3644_v17, %s3352_s22 }
 0x29f   : > { %1179 = vrot.lane.b32.xlu1 %v1212_v16, %s3353_s2 }
 0x2a0   : > { %1177 = vrot.lane.b32.xlu0 %v3644_v17, %s3353_s2  ;;  %s4417_s2 = smov 127  }
 0x2a3   : > { %1157 = vrot.lane.b32.xlu1 %v1212_v16, %s3354_s23 }
 0x2a4   : > { %1155 = vrot.lane.b32.xlu0 %v3644_v17, %s3354_s23  ;;  %s4419_s23 = sld [smem:[#allocation9_spill]] }
 0x2a7   : > { %1135 = vrot.lane.b32.xlu1 %v1212_v16, %s3355_s24 }
 0x2a8   : > { %1133 = vrot.lane.b32.xlu0 %v3644_v17, %s3355_s24 }
 0x2aa   : > { %s626_s24 = scalar_lea.vmem %s4419_s23, %s3056_s1  ;;  %s3362_s1 = smov 106  }
 0x2ab   : > { %1113 = vrot.lane.b32.xlu1 %v1212_v16, %s3356_s25  ;;  %v654_v5 = vld [vmem:[%s626_s24] sm:$0xff]  ;;  %s3365_s23 = smov 117   ;;  %s3366_s24 = smov 118  }
 0x2ac   : > { %1111 = vrot.lane.b32.xlu0 %v3644_v17, %s3356_s25 }
 0x2af   : > { %1091 = vrot.lane.b32.xlu1 %v1212_v16, %s4417_s2 }
 0x2b0   : > { %1089 = vrot.lane.b32.xlu0 %v3644_v17, %s4417_s2 }
 0x2b3   : > { %1087 = vrot.lane.b32.xlu1 %v1210_v14, %s4417_s2 }
 0x2b4   : > { %1085 = vrot.lane.b32.xlu0 %v3624_v15, %s4417_s2 }
 0x2b7   : > { %1245 = vrot.lane.b32.xlu1 %v1212_v16, %s4418_s20 }
 0x2b8   : > { %1243 = vrot.lane.b32.xlu0 %v3644_v17, %s4418_s20 }
 0x2bb   : > { %1241 = vrot.lane.b32.xlu1 %v1210_v14, %s4418_s20 }
 0x2bc   : > { %1239 = vrot.lane.b32.xlu0 %v3624_v15, %s4418_s20  ;;  %s3363_s20 = smov 107  }
 0x2f1   : > { %v1220_v31 = vpop.permute.xlu1 %1219 }
 0x2f2   : > { %v1218_v32 = vpop.permute.xlu0 %1217 }
 0x2f3   : > { %v1225_v46 = vsel %vm923_vm4, %v1218_v32, %v1220_v31 }
 0x2f5   : > { %v1198_v33 = vpop.permute.xlu1 %1197 }
 0x2f6   : > { %v1196_v34 = vpop.permute.xlu0 %1195 }
 0x2f7   : > { %v1203_v50 = vsel %vm900_vm5, %v1196_v34, %v1198_v33 }
 0x2f9   : > { %v1176_v35 = vpop.permute.xlu1 %1175 }
 0x2fa   : > { %v1174_v36 = vpop.permute.xlu0 %1173 }
 0x2fb   : > { %v1181_v54 = vsel %vm877_vm6, %v1174_v36, %v1176_v35 }
 0x2fd   : > { %v1154_v37 = vpop.permute.xlu1 %1153 }
 0x2fe   : > { %v1152_v38 = vpop.permute.xlu0 %1151 }
 0x2ff   : > { %v1159_v58 = vsel %vm854_vm7, %v1152_v38, %v1154_v37 }
 0x301   : > { %v1132_v39 = vpop.permute.xlu1 %1131 }
 0x302   : > { %v1130_v40 = vpop.permute.xlu0 %1129 }
 0x303   : > { %v1137_v3 = vsel %vm831_vm8, %v1130_v40, %v1132_v39 }
 0x305   : > { %v1110_v41 = vpop.permute.xlu1 %1109 }
 0x306   : > { %v1108_v42 = vpop.permute.xlu0 %1107 }
 0x307   : > { %v1115_v8 = vsel %vm808_vm9, %v1108_v42, %v1110_v41 }
 0x309   : > { %v1224_v43 = vpop.permute.xlu1 %1223 }
 0x30a   : > { %v1222_v44 = vpop.permute.xlu0 %1221 }
 0x30b   : > { %v1226_v45 = vsel %vm923_vm4, %v1222_v44, %v1224_v43  ;;  %vm1526_vm4 = vcmask 875520  }
 0x30c   : > { %1284 = vmatpush1.msra.mxu1 %v1226_v45 }
 0x30d   : > { %1285 = vmatprep.subr.mxu1 %v3349_v0  ;;  %v1202_v47 = vpop.permute.xlu1 %1201 }
 0x30e   : > { %1286 = vmatpush1.msra.mxu1 %v1225_v46  ;;  %v1200_v48 = vpop.permute.xlu0 %1199 }
 0x30f   : > { %1287 = vmatprep.subr.mxu1 %v3349_v0  ;;  %v1204_v49 = vsel %vm900_vm5, %v1200_v48, %v1202_v47 }
 0x310   : > { %1288 = vmatpush1.msra.mxu1 %v1204_v49 }
 0x311   : > { %1289 = vmatprep.subr.mxu1 %v3349_v0  ;;  %v1180_v51 = vpop.permute.xlu1 %1179 }
 0x312   : > { %1290 = vmatpush1.msra.mxu1 %v1203_v50  ;;  %v1178_v52 = vpop.permute.xlu0 %1177 }
 0x313   : > { %1291 = vmatprep.subr.mxu1 %v3349_v0  ;;  %v1182_v53 = vsel %vm877_vm6, %v1178_v52, %v1180_v51  ;;  %vm1514_vm6 = vcmask 883712  }
 0x314   : > { %1292 = vmatpush1.msra.mxu1 %v1182_v53 }
 0x315   : > { %1293 = vmatprep.subr.mxu1 %v3349_v0  ;;  %v1158_v55 = vpop.permute.xlu1 %1157 }
 0x316   : > { %1294 = vmatpush1.msra.mxu1 %v1181_v54  ;;  %v1156_v56 = vpop.permute.xlu0 %1155 }
 0x317   : > { %1295 = vmatprep.subr.mxu1 %v3349_v0  ;;  %v1160_v57 = vsel %vm854_vm7, %v1156_v56, %v1158_v55  ;;  %vm1491_vm7 = vcmask 957440  }
 0x318   : > { %1296 = vmatpush1.msra.mxu1 %v1160_v57 }
 0x319   : > { %1297 = vmatprep.subr.mxu1 %v3349_v0  ;;  %v1136_v59 = vpop.permute.xlu1 %1135 }
 0x31a   : > { %1298 = vmatpush1.msra.mxu1 %v1159_v58  ;;  %v1134_v60 = vpop.permute.xlu0 %1133 }
 0x31b   : > { %1299 = vmatprep.subr.mxu1 %v3349_v0  ;;  %v1138_v62 = vsel %vm831_vm8, %v1134_v60, %v1136_v59  ;;  %vm1479_vm8 = vcmask 965632  }
 0x31c   : > { %1300 = vmatpush1.msra.mxu1 %v1138_v62 }
 0x31d   : > { %1301 = vmatprep.subr.mxu1 %v3349_v0  ;;  %v1114_v4 = vpop.permute.xlu1 %1113 }
 0x31e   : > { %1302 = vmatpush1.msra.mxu1 %v1137_v3  ;;  %v1112_v6 = vpop.permute.xlu0 %1111 }
 0x31f   : > { %1303 = vmatprep.subr.mxu1 %v3349_v0  ;;  %v1116_v7 = vsel %vm808_vm9, %v1112_v6, %v1114_v4  ;;  %v663_v6 = vld [vmem:[%s4392_s5] sm:$0xff] }
 0x320   : > { %1304 = vmatpush1.msra.mxu1 %v1116_v7  ;;  %v734_v7 = vld [vmem:[%s4399_s12] sm:$0x1] }
 0x321   : > { %1305 = vmatprep.subr.mxu1 %v3349_v0  ;;  %v1092_v9 = vpop.permute.xlu1 %1091  ;;  %vm735_vm12 = vcmp.ne.f32.partialorder %v734_v7, 0.0  ;;  %v725_v7 = vld [vmem:[%s4397_s10 + $0x148] sm:$0xff] }
 0x322   : > { %1306 = vmatpush1.msra.mxu1 %v1115_v8  ;;  %v1090_v10 = vpop.permute.xlu0 %1089  ;;  %v1625_v8 = vsel %vm735_vm12, 1, %v3359_v2 }
 0x323   : > { %1307 = vmatprep.subr.mxu1 %v3349_v0  ;;  %v1094_v11 = vsel %vm785_vm10, %v1090_v10, %v1092_v9  ;;  %v1629_v9 = vrot.slane %v1625_v8, %v3606_v1  ;;  %v722_v8 = vld [vmem:[%s4397_s10 + $0x130] sm:$0xff]  ;;  %v3367_v10 = vmov 1966171168  }
 0x324   : > { %1308 = vmatpush1.msra.mxu1 %v1094_v11 }
 0x325   : > { %1309 = vmatprep.subr.mxu1 %v3349_v0  ;;  %v1088_v12 = vpop.permute.xlu1 %1087 }
 0x326   : > { %v1086_v13 = vpop.permute.xlu0 %1085 }
 0x327   : > { %v1093_v14 = vsel %vm785_vm10, %v1086_v13, %v1088_v12 }
 0x328   : > { %1310 = vmatpush1.msra.mxu1 %v1093_v14 }
 0x329   : > { %1311 = vmatprep.subr.mxu1 %v3349_v0  ;;  %v1246_v16 = vpop.permute.xlu1 %1245 }
 0x32a   : > { %1312 = vmatpush1.msra.mxu1 %v3644_v17  ;;  %v1244_v19 = vpop.permute.xlu0 %1243  ;;  %v671_v17 = vld [vmem:[%s4396_s9 + $0x18] sm:$0xff] }
 0x32b   : > { %1313 = vmatprep.subr.mxu1 %v3349_v0  ;;  %v1248_v20 = vsel %vm946_vm11, %v1244_v19, %v1246_v16 }
 0x32c   : > { %1314 = vmatpush1.msra.mxu1 %v3624_v15  ;;  %v672_v15 = vld [vmem:[%s4396_s9 + $0x20] sm:$0xff] }
 0x32d   : > { %1343 = vmatprep.subr.mxu1 %v3349_v0  ;;  %v1242_v21 = vpop.permute.xlu1 %1241  ;;  %3174 = vmatpush3.msra.mxu0 %v672_v15  ;;  %v724_v15 = vld [vmem:[%s4397_s10 + $0x140] sm:$0xff] }
 0x32e   : > { %1344 = vmatpush2.msra.mxu1 %v1248_v20  ;;  %v1240_v22 = vpop.permute.xlu0 %1239  ;;  %3175 = vmatprep.subr.mxu0 %v3349_v0  ;;  %v730_v20 = vld [vmem:[%s4397_s10 + $0x170] sm:$0xff] }
 0x32f   : > { %1345 = vmatprep.subr.mxu1 %v3349_v0  ;;  %v1247_v23 = vsel %vm946_vm11, %v1240_v22, %v1242_v21  ;;  %3176 = vmatpush3.msra.mxu0 %v671_v17  ;;  %vm1551_vm11 = vcmask 588800   ;;  %v729_v21 = vld [vmem:[%s4397_s10 + $0x168] sm:$0xff]  ;;  %v727_v22 = vld [vmem:[%s4397_s10 + $0x158] sm:$0xff] }
 0x330   : > { %1346 = vmatpush2.msra.mxu1 %v1247_v23  ;;  %3177 = vmatprep.subr.mxu0 %v3349_v0  ;;  %v726_v23 = vld [vmem:[%s4397_s10 + $0x150] sm:$0xff]  ;;  %v723_v17 = vld [vmem:[%s4397_s10 + $0x138] sm:$0xff] }
 0x331   : > { %1348 = vmatmul.mubr.f32.vlgmr.msra.gmra.mxu1 %v3667_v18  ;;  %3186 = vmatprep.subr.mxu1 %v3349_v0  ;;  %v670_v18 = vld [vmem:[%s4396_s9 + $0x10] sm:$0xff] }
 0x332   : > { %3178 = vmatpush3.msra.mxu0 %v670_v18  ;;  %3204 = vmatprep.mubr.msk.f32.mxu1 %vm3360_vm14, %v3349_v0  ;;  %v721_v18 = vld [vmem:[%s4397_s10 + $0x128] sm:$0xff] }
 0x333   : > { %3179 = vmatprep.subr.mxu0 %v3349_v0 }
 0x334   : > { %3180 = vmatpush3.msra.mxu0 %v669_v24  ;;  %v720_v24 = vld [vmem:[%s4397_s10 + $0x120] sm:$0xff] }
 0x335   : > { %3181 = vmatprep.subr.mxu0 %v3349_v0 }
 0x336   : > { %3182 = vmatpush3.msra.mxu0 %v668_v25  ;;  %v718_v25 = vld [vmem:[%s4397_s10 + $0x110] sm:$0xff] }
 0x337   : > { %1821 = vmatprep.subr.mxu0 %v730_v20  ;;  %v697_v20 = vld [vmem:[%s4397_s10 + $0x68] sm:$0xff] }
 0x3f1   : > { %v1349_v26 = vpop.f32.mrf.mxu1 }
 0x3f2   : > { %v1353_v27 = vsel %vm3610_vm13, %v1349_v26, 0.0  ;;  %vm3868_vm13 = vcmp.eq.s32.totalorder %v1629_v9, 1  ;;  %v717_v26 = vld [vmem:[%s4397_s10 + $0x108] sm:$0xff]  ;;  %v719_v9 = vld [vmem:[%s4397_s10 + $0x118] sm:$0xff] }
 0x3f3   : > { %1354 = vst [vmem:[%s635_s19] sm:$0x3] %v1353_v27  ;;  %v1356_v28 = vrot.slane %v1353_v27, 7  ;;  %v1351_v29 = vpop.f32.mrf.mxu1  ;;  %s3361_s19 = smov 11  }
 0x3f4   : > { %v712_v29 = vld [vmem:[%s4397_s10 + $0xe0] sm:$0xff] }
 0x3f5   : > { %v1358_v30 = vsub.f32 %v1353_v27, %v1356_v28  ;;  %v715_v27 = vld [vmem:[%s4397_s10 + $0xf8] sm:$0xff]  ;;  %v714_v28 = vld [vmem:[%s4397_s10 + $0xf0] sm:$0xff] }
 0x3f7   : > { %vm1359_vm15 = vcmp.gt.f32.partialorder %v1358_v30, 1.3862944  ;;  %v711_v30 = vld [vmem:[%s4397_s10 + $0xd8] sm:$0xff] }
 0x3f8   : > { %v1360_v31 = vsel %vm1359_vm15, 1.0, %v3349_v0  ;;  %vm748_vm15 = vcmask 154624  }
 0x3f9   : > { %v1362_v32 = vrot.slane %v1360_v31, 1  ;;  %v709_v31 = vld [vmem:[%s4397_s10 + $0xc8] sm:$0xff]  ;;  %749 = vst.msk [vmem:[#allocation6] sm:$0xff] %vm748_vm15, %v3349_v0 }
 0x3fb   : > { %3184 = vmatmul.mubr.f32.vlgmr.msra.gmra.mxu0 %v1362_v32  ;;  %v708_v32 = vld [vmem:[%s4397_s10 + $0xc0] sm:$0xff] }
 0x3fc   : > { %1885 = vmatprep.mubr.f32.mxu0 %v3349_v0  ;;  %1822 = vmatpush1.msra.mxu0 %v729_v21  ;;  %v696_v21 = vld [vmem:[%s4397_s10 + $0x60] sm:$0xff] }
 0x3fd   : > { %1823 = vmatprep.subr.mxu0 %v727_v22  ;;  %v698_v22 = vld [vmem:[%s4397_s10 + $0x70] sm:$0xff] }
 0x3fe   : > { %1824 = vmatpush1.msra.mxu0 %v726_v23  ;;  %v694_v23 = vld [vmem:[%s4397_s10 + $0x50] sm:$0xff] }
 0x3ff   : > { %1825 = vmatprep.subr.mxu0 %v724_v15  ;;  %v693_v15 = vld [vmem:[%s4397_s10 + $0x48] sm:$0xff] }
 0x400   : > { %1826 = vmatpush1.msra.mxu0 %v723_v17  ;;  %v695_v17 = vld [vmem:[%s4397_s10 + $0x58] sm:$0xff] }
 0x401   : > { %1827 = vmatprep.subr.mxu0 %v721_v18  ;;  %v691_v18 = vld [vmem:[%s4397_s10 + $0x38] sm:$0xff] }
 0x402   : > { %1828 = vmatpush1.msra.mxu0 %v720_v24  ;;  %v690_v24 = vld [vmem:[%s4397_s10 + $0x30] sm:$0xff] }
 0x403   : > { %1829 = vmatprep.subr.mxu0 %v718_v25  ;;  %v692_v25 = vld [vmem:[%s4397_s10 + $0x40] sm:$0xff] }
 0x404   : > { %1830 = vmatpush1.msra.mxu0 %v717_v26  ;;  %v688_v26 = vld [vmem:[%s4397_s10 + $0x20] sm:$0xff] }
 0x405   : > { %1831 = vmatprep.subr.mxu0 %v715_v27  ;;  %v687_v27 = vld [vmem:[%s4397_s10 + $0x18] sm:$0xff] }
 0x406   : > { %1832 = vmatpush1.msra.mxu0 %v714_v28  ;;  %v689_v28 = vld [vmem:[%s4397_s10 + $0x28] sm:$0xff] }
 0x407   : > { %1833 = vmatprep.subr.mxu0 %v712_v29  ;;  %v685_v29 = vld [vmem:[%s4397_s10 + $0x8] sm:$0xff] }
 0x408   : > { %1834 = vmatpush1.msra.mxu0 %v711_v30  ;;  %v684_v30 = vld [vmem:[%s4397_s10] sm:$0xff] }
 0x409   : > { %1835 = vmatprep.subr.mxu0 %v709_v31  ;;  %v686_v31 = vld [vmem:[%s4397_s10 + $0x10] sm:$0xff] }
 0x40a   : > { %1836 = vmatpush1.msra.mxu0 %v708_v32 }
 0x4bb   : > { %v1430_v33 = vpop.f32.mrf.mxu0 }
 0x4bc   : > { %1434 = vst [vmem:[%s647_s30] sm:$0x1] %v1430_v33  ;;  %v1438_v34 = vrot.slane %v1430_v33, %v3606_v1  ;;  %v705_v33 = vld [vmem:[%s4397_s10 + $0xa8] sm:$0xff]  ;;  %s4422_s30 = sshll.u32 %s4427_s28, 1 }
 0x4bd   : > { %v3185_v35 = vpop.f32.mrf.mxu0 }
 0x4be   : > { %v1439_v36 = vmul.f32 %v1438_v34, %v654_v5  ;;  %v706_v5 = vld [vmem:[%s4397_s10 + $0xb0] sm:$0xff]  ;;  %v703_v34 = vld [vmem:[%s4397_s10 + $0x98] sm:$0xff] }
 0x4bf   : > { %1837 = vmatprep.subr.mxu0 %v706_v5  ;;  %v702_v35 = vld [vmem:[%s4397_s10 + $0x90] sm:$0xff] }
 0x4c0   : > { %1441 = vrot.lane.b32.xlu0 %v1439_v36, %s3361_s19  ;;  %1838 = vmatpush1.msra.mxu0 %v705_v33  ;;  %v700_v36 = vld [vmem:[%s4397_s10 + $0x80] sm:$0xff] }
 0x4c1   : > { %1839 = vmatprep.subr.mxu0 %v703_v34 }
 0x4c2   : > { %1840 = vmatpush1.msra.mxu0 %v702_v35 }
 0x4c3   : > { %1841 = vmatprep.subr.mxu0 %v700_v36 }
 0x532   : > { %v1442_v37 = vpop.permute.xlu0 %1441 }
 0x533   : > { %1445 = vst.msk [vmem:[#allocation4] sm:$0xff] %vm1444_vm2, %v1442_v37 }
 0x534   : > { %1446 = vst.msk [vmem:[#allocation4 + $0x8] sm:$0xff] %vm744_vm0, %v1442_v37  ;;  %v699_v37 = vld [vmem:[%s4397_s10 + $0x78] sm:$0xff] }
 0x535   : > { %1842 = vmatpush1.msra.mxu0 %v699_v37 }
 0x536   : > { %1843 = vmatprep.subr.mxu0 %v697_v20 }
 0x537   : > { %1844 = vmatpush1.msra.mxu0 %v696_v21 }
 0x538   : > { %1845 = vmatprep.subr.mxu0 %v694_v23 }
 0x539   : > { %1846 = vmatpush1.msra.mxu0 %v693_v15 }
 0x53a   : > { %v3813_v39 = vld [vmem:[#allocation4] sm:$0xff]  ;;  %1847 = vmatprep.subr.mxu0 %v691_v18 }
 0x53b   : > { %v1531_v38 = vld [vmem:[#allocation4 + $0x8] sm:$0xff]  ;;  %1534 = vrot.lane.b32.xlu1 %v3813_v39, %s3362_s1  ;;  %1848 = vmatpush1.msra.mxu0 %v690_v24 }
 0x53c   : > { %1536 = vrot.lane.b32.xlu0 %v1531_v38, %s3362_s1  ;;  %1849 = vmatprep.subr.mxu0 %v688_v26 }
 0x53d   : > { %1850 = vmatpush1.msra.mxu0 %v687_v27 }
 0x53e   : > { %1851 = vmatprep.subr.mxu0 %v685_v29 }
 0x53f   : > { %1522 = vrot.lane.b32.xlu1 %v3813_v39, %s3363_s20  ;;  %1852 = vmatpush1.msra.mxu0 %v684_v30 }
 0x540   : > { %1524 = vrot.lane.b32.xlu0 %v1531_v38, %s3363_s20 }
 0x543   : > { %1510 = vrot.lane.b32.xlu1 %v3813_v39, %s3364_s21 }
 0x544   : > { %1512 = vrot.lane.b32.xlu0 %v1531_v38, %s3364_s21 }
 0x547   : > { %1499 = vrot.lane.b32.xlu1 %v3813_v39, %s3352_s22 }
 0x548   : > { %1501 = vrot.lane.b32.xlu0 %v1531_v38, %s3352_s22 }
 0x54b   : > { %1487 = vrot.lane.b32.xlu1 %v3813_v39, %s3365_s23 }
 0x54c   : > { %1489 = vrot.lane.b32.xlu0 %v1531_v38, %s3365_s23 }
 0x54f   : > { %1475 = vrot.lane.b32.xlu1 %v3813_v39, %s3366_s24 }
 0x550   : > { %1477 = vrot.lane.b32.xlu0 %v1531_v38, %s3366_s24 }
 0x553   : > { %1464 = vrot.lane.b32.xlu1 %v3813_v39, %s3356_s25 }
 0x554   : > { %1466 = vrot.lane.b32.xlu0 %v1531_v38, %s3356_s25 }
 0x557   : > { %1453 = vrot.lane.b32.xlu1 %v3813_v39, %s4417_s2 }
 0x558   : > { %1455 = vrot.lane.b32.xlu0 %v1531_v38, %s4417_s2 }
 0x5ad   : > { %v1535_v41 = vpop.permute.xlu1 %1534 }
 0x5ae   : > { %v1537_v40 = vpop.permute.xlu0 %1536 }
 0x5af   : > { %v1539_v42 = vsel %vm1538_vm3, %v1535_v41, %v1537_v40 }
 0x5b0   : > { %3187 = vmatpush3.msra.mxu1 %v1539_v42 }
 0x5b1   : > { %3188 = vmatprep.subr.mxu1 %v3349_v0  ;;  %v1523_v44 = vpop.permute.xlu1 %1522 }
 0x5b2   : > { %v1525_v43 = vpop.permute.xlu0 %1524 }
 0x5b3   : > { %v1527_v45 = vsel %vm1526_vm4, %v1523_v44, %v1525_v43 }
 0x5b4   : > { %3189 = vmatpush3.msra.mxu1 %v1527_v45 }
 0x5b5   : > { %3190 = vmatprep.subr.mxu1 %v3349_v0  ;;  %v1511_v47 = vpop.permute.xlu1 %1510 }
 0x5b6   : > { %v1513_v46 = vpop.permute.xlu0 %1512 }
 0x5b7   : > { %v1515_v48 = vsel %vm1514_vm6, %v1511_v47, %v1513_v46 }
 0x5b8   : > { %3191 = vmatpush3.msra.mxu1 %v1515_v48 }
 0x5b9   : > { %3192 = vmatprep.subr.mxu1 %v3349_v0  ;;  %v1500_v50 = vpop.permute.xlu1 %1499 }
 0x5ba   : > { %v1502_v49 = vpop.permute.xlu0 %1501 }
 0x5bb   : > { %v1503_v51 = vsel %vm900_vm5, %v1500_v50, %v1502_v49 }
 0x5bc   : > { %3193 = vmatpush3.msra.mxu1 %v1503_v51 }
 0x5bd   : > { %3194 = vmatprep.subr.mxu1 %v3349_v0  ;;  %v1488_v53 = vpop.permute.xlu1 %1487 }
 0x5be   : > { %v1490_v52 = vpop.permute.xlu0 %1489 }
 0x5bf   : > { %v1492_v54 = vsel %vm1491_vm7, %v1488_v53, %v1490_v52 }
 0x5c0   : > { %3195 = vmatpush3.msra.mxu1 %v1492_v54 }
 0x5c1   : > { %3196 = vmatprep.subr.mxu1 %v3349_v0  ;;  %v1476_v56 = vpop.permute.xlu1 %1475 }
 0x5c2   : > { %v1478_v55 = vpop.permute.xlu0 %1477 }
 0x5c3   : > { %v1480_v57 = vsel %vm1479_vm8, %v1476_v56, %v1478_v55 }
 0x5c4   : > { %3197 = vmatpush3.msra.mxu1 %v1480_v57 }
 0x5c5   : > { %3198 = vmatprep.subr.mxu1 %v3349_v0  ;;  %v1465_v59 = vpop.permute.xlu1 %1464 }
 0x5c6   : > { %v1467_v58 = vpop.permute.xlu0 %1466 }
 0x5c7   : > { %v1468_v60 = vsel %vm808_vm9, %v1465_v59, %v1467_v58 }
 0x5c8   : > { %3199 = vmatpush3.msra.mxu1 %v1468_v60 }
 0x5c9   : > { %3200 = vmatprep.subr.mxu1 %v3349_v0  ;;  %v1454_v3 = vpop.permute.xlu1 %1453 }
 0x5ca   : > { %v1456_v62 = vpop.permute.xlu0 %1455 }
 0x5cb   : > { %v1457_v4 = vsel %vm785_vm10, %v1454_v3, %v1456_v62  ;;  %v664_v3 = vld [vmem:[%s4393_s6] sm:$0x3] }
 0x5cc   : > { %3201 = vmatpush3.msra.mxu1 %v1457_v4  ;;  %v731_v4 = vld [vmem:[%s4397_s10 + $0x178] sm:$0xff] }
 0x5cd   : > { %3202 = vmatprep.subr.mxu1 %v3349_v0 }
 0x5ce   : > { %3203 = vmatpush3.msra.mxu1 %v3813_v39 }
 0x5cf   : > { %3205 = vmatmul.mubr.msk.f32.vlgmr.msra.gmra.mxu1 %vm1551_vm11, %v663_v6  ;;  %3207 = vmatprep.subr.mxu1 %v3349_v0  ;;  %v728_v6 = vld [vmem:[%s4397_s10 + $0x160] sm:$0xff] }
 0x5d0   : > { %3225 = vmatprep.mubr.msk.f32.mxu1 %vm3360_vm14, %v3349_v0 }
 0x68f   : > { %v1621_v11 = vpop.f32.mrf.mxu1 }
 0x690   : > { %v1631_v12 = vsel %vm3868_vm13, %v1621_v11, 0.0  ;;  %v716_v11 = vld [vmem:[%s4397_s10 + $0x100] sm:$0xff] }
 0x691   : > { %1633 = vrot.lane.b32.xlu1 %v1631_v12, %s3361_s19  ;;  %v3206_v13 = vpop.f32.mrf.mxu1  ;;  %v713_v12 = vld [vmem:[%s4397_s10 + $0xe8] sm:$0xff]  ;;  %s639_s19 = scalar_lea.vmem %s4402_s15, %s4422_s30  ;;  %s3368_s30 = smov 19  }
 0x692   : > { %v710_v13 = vld [vmem:[%s4397_s10 + $0xd0] sm:$0xff] }
 0x703   : > { %v1634_v14 = vpop.permute.xlu1 %1633 }
 0x704   : > { %1637 = vst.msk [vmem:[#allocation4 + $0x8] sm:$0xff] %vm744_vm0, %v1634_v14  ;;  %vm750_vm0 = vcmask 310424  }
 0x705   : > { %1636 = vst.msk [vmem:[#allocation4] sm:$0xff] %vm1444_vm2, %v1634_v14  ;;  %v707_v14 = vld [vmem:[%s4397_s10 + $0xb8] sm:$0xff]  ;;  %vm2230_vm2 = vcmask 736256  }
 0x706   : > { %751 = vst.msk [vmem:[#allocation6 + $0x18] sm:$0xff] %vm750_vm0, %v3349_v0 }
 0x70b   : > { %v1718_v16 = vld [vmem:[#allocation4 + $0x8] sm:$0xff] }
 0x70c   : > { %v3877_v19 = vld [vmem:[#allocation4] sm:$0xff]  ;;  %1723 = vrot.lane.b32.xlu1 %v1718_v16, %s3362_s1 }
 0x70d   : > { %1721 = vrot.lane.b32.xlu0 %v3877_v19, %s3362_s1  ;;  %s3305_s1 = smul.u32 24, %s4427_s28 }
 0x710   : > { %1712 = vrot.lane.b32.xlu1 %v1718_v16, %s3363_s20 }
 0x711   : > { %1710 = vrot.lane.b32.xlu0 %v3877_v19, %s3363_s20  ;;  %s3370_s20 = smov 90  }
 0x714   : > { %1701 = vrot.lane.b32.xlu1 %v1718_v16, %s3364_s21 }
 0x715   : > { %1699 = vrot.lane.b32.xlu0 %v3877_v19, %s3364_s21 }
 0x718   : > { %1690 = vrot.lane.b32.xlu1 %v1718_v16, %s3352_s22 }
 0x719   : > { %1688 = vrot.lane.b32.xlu0 %v3877_v19, %s3352_s22  ;;  %s4423_s22 = sld [smem:[#allocation10_spill]] }
 0x71c   : > { %1679 = vrot.lane.b32.xlu1 %v1718_v16, %s3365_s23 }
 0x71d   : > { %1677 = vrot.lane.b32.xlu0 %v3877_v19, %s3365_s23 }
 0x71f   : > { %s631_s23 = scalar_lea.vmem %s4423_s22, %s3305_s1  ;;  %s3369_s1 = smov 91  }
 0x720   : > { %1668 = vrot.lane.b32.xlu1 %v1718_v16, %s3366_s24  ;;  %s3372_s22 = smov 109  }
 0x721   : > { %1666 = vrot.lane.b32.xlu0 %v3877_v19, %s3366_s24 }
 0x724   : > { %1657 = vrot.lane.b32.xlu1 %v1718_v16, %s3356_s25 }
 0x725   : > { %1655 = vrot.lane.b32.xlu0 %v3877_v19, %s3356_s25 }
 0x728   : > { %1646 = vrot.lane.b32.xlu1 %v1718_v16, %s4417_s2  ;;  %v704_v16 = vld [vmem:[%s4397_s10 + $0xa0] sm:$0xff] }
 0x729   : > { %1644 = vrot.lane.b32.xlu0 %v3877_v19, %s4417_s2 }
 0x77e   : > { %v1724_v38 = vpop.permute.xlu1 %1723 }
 0x77f   : > { %v1722_v39 = vpop.permute.xlu0 %1721 }
 0x780   : > { %v1725_v40 = vsel %vm1538_vm3, %v1722_v39, %v1724_v38  ;;  %v1967_v38 = vunpack.c.l.s4 %v3367_v10  ;;  %vm2204_vm3 = vcmask 744448  }
 0x781   : > { %3208 = vmatpush3.msra.mxu1 %v1725_v40  ;;  %v655_v40 = vld [vmem:[%s631_s23] sm:$0xff] }
 0x782   : > { %3209 = vmatprep.subr.mxu1 %v3349_v0  ;;  %v1713_v41 = vpop.permute.xlu1 %1712  ;;  %v1968_v39 = vunpack.c.0.s8 %v1967_v38 }
 0x783   : > { %v1711_v42 = vpop.permute.xlu0 %1710 }
 0x784   : > { %v1714_v43 = vsel %vm1526_vm4, %v1711_v42, %v1713_v41  ;;  %vm2178_vm4 = vcmask 752640  }
 0x785   : > { %3210 = vmatpush3.msra.mxu1 %v1714_v43 }
 0x786   : > { %3211 = vmatprep.subr.mxu1 %v3349_v0  ;;  %v1702_v44 = vpop.permute.xlu1 %1701 }
 0x787   : > { %v1700_v45 = vpop.permute.xlu0 %1699 }
 0x788   : > { %v1703_v46 = vsel %vm1514_vm6, %v1700_v45, %v1702_v44  ;;  %v1971_v44 = vsub.s32 %v1968_v39, %v3603_v63  ;;  %v656_v45 = vld [vmem:[%s631_s23 + $0x8] sm:$0xff] }
 0x789   : > { %3212 = vmatpush3.msra.mxu1 %v1703_v46 }
 0x78a   : > { %3213 = vmatprep.subr.mxu1 %v3349_v0  ;;  %v1691_v47 = vpop.permute.xlu1 %1690 }
 0x78b   : > { %v1689_v48 = vpop.permute.xlu0 %1688 }
 0x78c   : > { %v1692_v49 = vsel %vm900_vm5, %v1689_v48, %v1691_v47 }
 0x78d   : > { %3214 = vmatpush3.msra.mxu1 %v1692_v49 }
 0x78e   : > { %3215 = vmatprep.subr.mxu1 %v3349_v0  ;;  %v1680_v50 = vpop.permute.xlu1 %1679 }
 0x78f   : > { %v1678_v51 = vpop.permute.xlu0 %1677 }
 0x790   : > { %v1681_v52 = vsel %vm1491_vm7, %v1678_v51, %v1680_v50  ;;  %vm2127_vm7 = vcmask 891904  }
 0x791   : > { %3216 = vmatpush3.msra.mxu1 %v1681_v52  ;;  %v657_v52 = vld [vmem:[%s631_s23 + $0x10] sm:$0xff]  ;;  %s3373_s23 = smov 110  }
 0x792   : > { %3217 = vmatprep.subr.mxu1 %v3349_v0  ;;  %v1669_v53 = vpop.permute.xlu1 %1668 }
 0x793   : > { %v1667_v54 = vpop.permute.xlu0 %1666 }
 0x794   : > { %v1670_v55 = vsel %vm1479_vm8, %v1667_v54, %v1669_v53  ;;  %vm2101_vm8 = vcmask 900096  }
 0x795   : > { %3218 = vmatpush3.msra.mxu1 %v1670_v55 }
 0x796   : > { %3219 = vmatprep.subr.mxu1 %v3349_v0  ;;  %v1658_v56 = vpop.permute.xlu1 %1657 }
 0x797   : > { %v1656_v57 = vpop.permute.xlu0 %1655 }
 0x798   : > { %v1659_v58 = vsel %vm808_vm9, %v1656_v57, %v1658_v56 }
 0x799   : > { %3220 = vmatpush3.msra.mxu1 %v1659_v58 }
 0x79a   : > { %3221 = vmatprep.subr.mxu1 %v3349_v0  ;;  %v1647_v59 = vpop.permute.xlu1 %1646 }
 0x79b   : > { %v1645_v60 = vpop.permute.xlu0 %1644 }
 0x79c   : > { %v1648_v62 = vsel %vm785_vm10, %v1645_v60, %v1647_v59 }
 0x79d   : > { %3222 = vmatpush3.msra.mxu1 %v1648_v62 }
 0x79e   : > { %3223 = vmatprep.subr.mxu1 %v3349_v0 }
 0x79f   : > { %3224 = vmatpush3.msra.mxu1 %v3877_v19  ;;  %v701_v19 = vld [vmem:[%s4397_s10 + $0x88] sm:$0xff] }
 0x7a0   : > { %3226 = vmatmul.mubr.msk.f32.vlgmr.msra.gmra.mxu1 %vm1551_vm11, %v664_v3  ;;  %3228 = vmatprep.subr.mxu1 %v3349_v0 }
 0x7a1   : > { %3229 = vmatpush3.msra.mxu1 %v731_v4  ;;  %3260 = vmatprep.mubr.msk.f32.mxu1 %vm3360_vm14, %v3349_v0 }
 0x7a2   : > { %3230 = vmatprep.subr.mxu1 %v3349_v0 }
 0x7a3   : > { %3231 = vmatpush3.msra.mxu1 %v728_v6 }
 0x7a4   : > { %3232 = vmatprep.subr.mxu1 %v3349_v0 }
 0x7a5   : > { %3233 = vmatpush3.msra.mxu1 %v725_v7 }
 0x7a6   : > { %3234 = vmatprep.subr.mxu1 %v3349_v0 }
 0x7a7   : > { %3235 = vmatpush3.msra.mxu1 %v722_v8 }
 0x7a8   : > { %3236 = vmatprep.subr.mxu1 %v3349_v0 }
 0x7a9   : > { %3237 = vmatpush3.msra.mxu1 %v719_v9 }
 0x7aa   : > { %3238 = vmatprep.subr.mxu1 %v3349_v0 }
 0x7ab   : > { %3239 = vmatpush3.msra.mxu1 %v716_v11 }
 0x7ac   : > { %3240 = vmatprep.subr.mxu1 %v3349_v0 }
 0x7ad   : > { %3241 = vmatpush3.msra.mxu1 %v713_v12 }
 0x7ae   : > { %3242 = vmatprep.subr.mxu1 %v3349_v0 }
 0x7af   : > { %3243 = vmatpush3.msra.mxu1 %v710_v13 }
 0x7b0   : > { %3244 = vmatprep.subr.mxu1 %v3349_v0 }
 0x7b1   : > { %3245 = vmatpush3.msra.mxu1 %v707_v14 }
 0x7b2   : > { %3246 = vmatprep.subr.mxu1 %v3349_v0 }
 0x7b3   : > { %3247 = vmatpush3.msra.mxu1 %v704_v16 }
 0x7b4   : > { %3248 = vmatprep.subr.mxu1 %v3349_v0 }
 0x7b5   : > { %3249 = vmatpush3.msra.mxu1 %v701_v19 }
 0x7b6   : > { %3250 = vmatprep.subr.mxu1 %v3349_v0 }
 0x7b7   : > { %3251 = vmatpush3.msra.mxu1 %v698_v22 }
 0x7b8   : > { %3252 = vmatprep.subr.mxu1 %v3349_v0 }
 0x7b9   : > { %3253 = vmatpush3.msra.mxu1 %v695_v17 }
 0x7ba   : > { %3254 = vmatprep.subr.mxu1 %v3349_v0 }
 0x7bb   : > { %3255 = vmatpush3.msra.mxu1 %v692_v25 }
 0x7bc   : > { %3256 = vmatprep.subr.mxu1 %v3349_v0 }
 0x7bd   : > { %3257 = vmatpush3.msra.mxu1 %v689_v28 }
 0x7be   : > { %3258 = vmatprep.subr.mxu1 %v3349_v0 }
 0x7bf   : > { %3259 = vmatpush3.msra.mxu1 %v686_v31 }
 0x7c0   : > { %3263 = vmatprep.subr.mxu1 %v3349_v0 }
 0x860   : > { %v1806_v32 = vpop.f32.mrf.mxu1 }
 0x861   : > { %v1810_v5 = vsel %vm3868_vm13, %v1806_v32, 0.0 }
 0x862   : > { %1811 = vst [vmem:[%s639_s19] sm:$0x3] %v1810_v5  ;;  %v1813_v33 = vrot.slane %v1810_v5, 7  ;;  %v3227_v34 = vpop.f32.mrf.mxu1  ;;  %s651_s19 = scalar_lea.vmem %s4405_s18, %s3307_s29 }
 0x864   : > { %v1815_v35 = vsub.f32 %v1810_v5, %v1813_v33 }
 0x866   : > { %vm1816_vm5 = vcmp.gt.f32.partialorder %v1815_v35, 1.3862944 }
 0x867   : > { %v1817_v36 = vsel %vm1816_vm5, 1.0, %v3349_v0 }
 0x868   : > { %v1819_v37 = vrot.slane %v1817_v36, 1 }
 0x86a   : > { %1886 = vmatmul.mubr.f32.vlgmr.msra.gmra.mxu0 %v1819_v37  ;;  %3261 = vmatmul.mubr.f32.vlgmr.msra.gmra.mxu1 %v1819_v37 }
 0x86b   : > { %2334 = vmatprep.mubr.f32.mxu0 %v3349_v0  ;;  %3281 = vmatprep.mubr.msk.f32.mxu1 %vm3360_vm14, %v3349_v0  ;;  %vm1991_vm14 = vcmp.lt.s32.totalorder %v1054_v61, 384 }
 0x92a   : > { %v1887_v41 = vpop.f32.mrf.mxu0  ;;  %v1958_v42 = vpop.f32.mrf.mxu1 }
 0x92b   : > { %v1997_v43 = vrot.slane %v1887_v41, %v3606_v1  ;;  %v2005_v49 = vrot.slane %v1958_v42, %v3606_v1  ;;  %v1979_v53 = vrot.slane %v1958_v42, %v1971_v44 }
 0x92c   : > { %v1889_v46 = vpop.f32.mrf.mxu0  ;;  %v3262_v47 = vpop.f32.mrf.mxu1 }
 0x92d   : > { %v2006_v48 = vmul.f32 %v1997_v43, %v655_v40  ;;  %v1965_v50 = vcombine.low %v1887_v41, %v1889_v46  ;;  %v2001_v51 = vrot.slane %v1889_v46, %v3606_v1  ;;  %v2008_v56 = vmul.f32 %v2005_v49, %v657_v52 }
 0x92f   : > { %v1972_v54 = vrot.slane %v1965_v50, %v1971_v44  ;;  %v2007_v55 = vmul.f32 %v2001_v51, %v656_v45  ;;  %2012 = vrot.lane.b32.xlu0 %v2006_v48, %s3368_s30 }
 0x931   : > { %v1980_v57 = vcombine.low %v1972_v54, %v1979_v53  ;;  %2014 = vrot.lane.b32.xlu1 %v2007_v55, %s3368_s30 }
 0x933   : > { %v1987_v58 = vrot.slane %v1980_v57, %v1971_v44  ;;  %2016 = vrot.lane.b32.xlu0 %v2008_v56, %s3368_s30 }
 0x935   : > { %1993 = vst.msk [vmem:[%s651_s19] sm:$0x7] %vm1991_vm14, %v1987_v58  ;;  %v665_v58 = vld [vmem:[%s4394_s7] sm:$0xff] }
 0x9a1   : > { %v2013_v59 = vpop.permute.xlu0 %2012 }
 0x9a2   : > { %2025 = vst.msk [vmem:[#allocation6] sm:$0xff] %vm2024_vm1, %v2013_v59 }
 0x9a3   : > { %v2015_v3 = vpop.permute.xlu1 %2014 }
 0x9a4   : > { %v4144_v4 = vsel %vm748_vm15, %v2013_v59, %v2015_v3 }
 0x9a5   : > { %v2017_v60 = vpop.permute.xlu0 %2016 }
 0x9a6   : > { %2028 = vst.msk [vmem:[#allocation6 + $0x18] sm:$0xff] %vm748_vm15, %v2017_v60  ;;  %v4147_v6 = vsel %vm748_vm15, %v2015_v3, %v2017_v60 }
 0x9a9   : > { %v4119_v62 = vld [vmem:[#allocation6] sm:$0xff] }
 0x9aa   : > { %2196 = vrot.lane.b32.xlu0 %v4119_v62, %s3369_s1  ;;  %2222 = vrot.lane.b32.xlu1 %v4119_v62, %s3370_s20 }
 0x9ad   : > { %v2217_v61 = vld [vmem:[#allocation6 + $0x18] sm:$0xff] }
 0x9ae   : > { %2170 = vrot.lane.b32.xlu0 %v4119_v62, %s3371_s26  ;;  %2228 = vrot.lane.b32.xlu1 %v2217_v61, %s3370_s20 }
 0x9b2   : > { %2145 = vrot.lane.b32.xlu0 %v4119_v62, %s3364_s21  ;;  %2202 = vrot.lane.b32.xlu1 %v2217_v61, %s3369_s1 }
 0x9b6   : > { %2119 = vrot.lane.b32.xlu0 %v4119_v62, %s3372_s22  ;;  %2176 = vrot.lane.b32.xlu1 %v2217_v61, %s3371_s26 }
 0x9ba   : > { %2093 = vrot.lane.b32.xlu0 %v4119_v62, %s3373_s23  ;;  %2151 = vrot.lane.b32.xlu1 %v2217_v61, %s3364_s21 }
 0x9be   : > { %2068 = vrot.lane.b32.xlu0 %v4119_v62, %s3356_s25  ;;  %2125 = vrot.lane.b32.xlu1 %v2217_v61, %s3372_s22 }
 0x9c2   : > { %2043 = vrot.lane.b32.xlu0 %v4119_v62, %s4417_s2  ;;  %2099 = vrot.lane.b32.xlu1 %v2217_v61, %s3373_s23 }
 0x9c6   : > { %2226 = vrot.lane.b32.xlu0 %v4147_v6, %s3370_s20  ;;  %2224 = vrot.lane.b32.xlu1 %v4144_v4, %s3370_s20 }
 0x9ca   : > { %2200 = vrot.lane.b32.xlu1 %v4147_v6, %s3369_s1  ;;  %2198 = vrot.lane.b32.xlu0 %v4144_v4, %s3369_s1 }
 0x9ce   : > { %2174 = vrot.lane.b32.xlu1 %v4147_v6, %s3371_s26  ;;  %2172 = vrot.lane.b32.xlu0 %v4144_v4, %s3371_s26 }
 0x9d2   : > { %2149 = vrot.lane.b32.xlu1 %v4147_v6, %s3364_s21  ;;  %2147 = vrot.lane.b32.xlu0 %v4144_v4, %s3364_s21 }
 0x9d6   : > { %2123 = vrot.lane.b32.xlu1 %v4147_v6, %s3372_s22  ;;  %2121 = vrot.lane.b32.xlu0 %v4144_v4, %s3372_s22 }
 0x9da   : > { %2097 = vrot.lane.b32.xlu1 %v4147_v6, %s3373_s23  ;;  %2095 = vrot.lane.b32.xlu0 %v4144_v4, %s3373_s23 }
 0x9de   : > { %2072 = vrot.lane.b32.xlu1 %v4147_v6, %s3356_s25  ;;  %2070 = vrot.lane.b32.xlu0 %v4144_v4, %s3356_s25 }
 0x9e2   : > { %2047 = vrot.lane.b32.xlu1 %v4147_v6, %s4417_s2  ;;  %2045 = vrot.lane.b32.xlu0 %v4144_v4, %s4417_s2 }
 0x9e6   : > { %2074 = vrot.lane.b32.xlu1 %v2217_v61, %s3356_s25  ;;  %2049 = vrot.lane.b32.xlu0 %v2217_v61, %s4417_s2 }
 0xa1c   : > { %v2197_v7 = vpop.permute.xlu0 %2196  ;;  %v2223_v8 = vpop.permute.xlu1 %2222 }
 0xa20   : > { %v2171_v9 = vpop.permute.xlu0 %2170  ;;  %v2229_v11 = vpop.permute.xlu1 %2228 }
 0xa24   : > { %v2146_v12 = vpop.permute.xlu0 %2145  ;;  %v2203_v13 = vpop.permute.xlu1 %2202 }
 0xa28   : > { %v2120_v14 = vpop.permute.xlu0 %2119  ;;  %v2177_v16 = vpop.permute.xlu1 %2176 }
 0xa2c   : > { %v2094_v19 = vpop.permute.xlu0 %2093  ;;  %v2152_v20 = vpop.permute.xlu1 %2151 }
 0xa30   : > { %v4183_v21 = vpop.permute.xlu0 %2068  ;;  %v2126_v22 = vpop.permute.xlu1 %2125 }
 0xa34   : > { %v4185_v23 = vpop.permute.xlu0 %2043  ;;  %v2100_v15 = vpop.permute.xlu1 %2099 }
 0xa38   : > { %v2227_v17 = vpop.permute.xlu0 %2226  ;;  %v2225_v18 = vpop.permute.xlu1 %2224 }
 0xa39   : > { %v2233_v24 = vsel %vm2230_vm2, %v2227_v17, %v2229_v11  ;;  %v2231_v25 = vsel %vm2230_vm2, %v2223_v8, %v2225_v18  ;;  %v2232_v26 = vsel %vm2230_vm2, %v2225_v18, %v2227_v17 }
 0xa3a   : > { %2284 = vmatprep.subr.mxu0 %v2232_v26  ;;  %3264 = vmatpush3.msra.mxu1 %v2233_v24  ;;  %v4315_v24 = vld [vmem:[%s4395_s8] sm:$0xff] }
 0xa3b   : > { %2285 = vmatpush1.msra.mxu0 %v2231_v25  ;;  %3265 = vmatprep.subr.mxu1 %v3349_v0 }
 0xa3c   : > { %v2199_v27 = vpop.permute.xlu0 %2198  ;;  %v2201_v28 = vpop.permute.xlu1 %2200 }
 0xa3d   : > { %v2205_v29 = vsel %vm2204_vm3, %v2197_v7, %v2199_v27  ;;  %v2207_v30 = vsel %vm2204_vm3, %v2201_v28, %v2203_v13  ;;  %v2206_v31 = vsel %vm2204_vm3, %v2199_v27, %v2201_v28  ;;  %v2418_v7 = vsub.s32 1, %v3603_v63 }
 0xa3e   : > { %2286 = vmatprep.subr.mxu0 %v2206_v31  ;;  %3266 = vmatpush3.msra.mxu1 %v2207_v30 }
 0xa3f   : > { %2287 = vmatpush1.msra.mxu0 %v2205_v29  ;;  %3267 = vmatprep.subr.mxu1 %v3349_v0 }
 0xa40   : > { %v2173_v32 = vpop.permute.xlu0 %2172  ;;  %v2175_v5 = vpop.permute.xlu1 %2174 }
 0xa41   : > { %v2179_v33 = vsel %vm2178_vm4, %v2171_v9, %v2173_v32  ;;  %v2181_v34 = vsel %vm2178_vm4, %v2175_v5, %v2177_v16  ;;  %v2180_v35 = vsel %vm2178_vm4, %v2173_v32, %v2175_v5  ;;  %v2422_v9 = vsub.s32 2, %v3603_v63 }
 0xa42   : > { %2288 = vmatprep.subr.mxu0 %v2180_v35  ;;  %3268 = vmatpush3.msra.mxu1 %v2181_v34 }
 0xa43   : > { %2289 = vmatpush1.msra.mxu0 %v2179_v33  ;;  %3269 = vmatprep.subr.mxu1 %v3349_v0 }
 0xa44   : > { %v2148_v36 = vpop.permute.xlu0 %2147  ;;  %v2150_v37 = vpop.permute.xlu1 %2149 }
 0xa45   : > { %v2153_v10 = vsel %vm1514_vm6, %v2146_v12, %v2148_v36  ;;  %v2155_v38 = vsel %vm1514_vm6, %v2150_v37, %v2152_v20  ;;  %v2154_v39 = vsel %vm1514_vm6, %v2148_v36, %v2150_v37 }
 0xa46   : > { %2290 = vmatprep.subr.mxu0 %v2154_v39  ;;  %3270 = vmatpush3.msra.mxu1 %v2155_v38 }
 0xa47   : > { %2291 = vmatpush1.msra.mxu0 %v2153_v10  ;;  %3271 = vmatprep.subr.mxu1 %v3349_v0 }
 0xa48   : > { %v2122_v40 = vpop.permute.xlu0 %2121  ;;  %v2124_v41 = vpop.permute.xlu1 %2123 }
 0xa49   : > { %v2128_v42 = vsel %vm2127_vm7, %v2120_v14, %v2122_v40  ;;  %v2130_v43 = vsel %vm2127_vm7, %v2124_v41, %v2126_v22  ;;  %v2129_v44 = vsel %vm2127_vm7, %v2122_v40, %v2124_v41 }
 0xa4a   : > { %2292 = vmatprep.subr.mxu0 %v2129_v44  ;;  %3272 = vmatpush3.msra.mxu1 %v2130_v43 }
 0xa4b   : > { %2293 = vmatpush1.msra.mxu0 %v2128_v42  ;;  %3273 = vmatprep.subr.mxu1 %v3349_v0 }
 0xa4c   : > { %v2096_v45 = vpop.permute.xlu0 %2095  ;;  %v2098_v46 = vpop.permute.xlu1 %2097 }
 0xa4d   : > { %v2102_v47 = vsel %vm2101_vm8, %v2094_v19, %v2096_v45  ;;  %v2104_v48 = vsel %vm2101_vm8, %v2098_v46, %v2100_v15  ;;  %v2103_v49 = vsel %vm2101_vm8, %v2096_v45, %v2098_v46 }
 0xa4e   : > { %2294 = vmatprep.subr.mxu0 %v2103_v49  ;;  %3274 = vmatpush3.msra.mxu1 %v2104_v48 }
 0xa4f   : > { %2295 = vmatpush1.msra.mxu0 %v2102_v47  ;;  %3275 = vmatprep.subr.mxu1 %v3349_v0 }
 0xa50   : > { %v2071_v50 = vpop.permute.xlu0 %2070  ;;  %v2073_v51 = vpop.permute.xlu1 %2072 }
 0xa51   : > { %v2076_v52 = vsel %vm808_vm9, %v4183_v21, %v2071_v50  ;;  %v2077_v53 = vsel %vm808_vm9, %v2071_v50, %v2073_v51 }
 0xa52   : > { %2296 = vmatprep.subr.mxu0 %v2077_v53 }
 0xa53   : > { %2297 = vmatpush1.msra.mxu0 %v2076_v52 }
 0xa54   : > { %v2046_v54 = vpop.permute.xlu0 %2045  ;;  %v2048_v55 = vpop.permute.xlu1 %2047 }
 0xa55   : > { %v2051_v56 = vsel %vm785_vm10, %v4185_v23, %v2046_v54  ;;  %v2052_v57 = vsel %vm785_vm10, %v2046_v54, %v2048_v55 }
 0xa56   : > { %2298 = vmatprep.subr.mxu0 %v2052_v57 }
 0xa57   : > { %2299 = vmatpush1.msra.mxu0 %v2051_v56 }
 0xa58   : > { %v2050_v59 = vpop.permute.xlu0 %2049  ;;  %2300 = vmatprep.subr.mxu0 %v4144_v4  ;;  %v2075_v60 = vpop.permute.xlu1 %2074 }
 0xa59   : > { %v2078_v61 = vsel %vm808_vm9, %v2073_v51, %v2075_v60  ;;  %2301 = vmatpush1.msra.mxu0 %v4119_v62  ;;  %v2053_v3 = vsel %vm785_vm10, %v2048_v55, %v2050_v59  ;;  %v736_v62 = vld [vmem:[%s4400_s13] sm:$0x7] }
 0xa5a   : > { %3067 = vmatmul.mubr.msk.f32.vlgmr.msra.gmra.mxu0 %vm1551_vm11, %v665_v58  ;;  %3276 = vmatpush3.msra.mxu1 %v2078_v61  ;;  %vm737_vm12 = vcmp.ne.f32.partialorder %v736_v62, 0.0 }
 0xa5b   : > { %3277 = vmatprep.subr.mxu1 %v3349_v0  ;;  %2752 = vmatprep.mubr.f32.mxu0 %v3349_v0  ;;  %v2411_v4 = vsel %vm737_vm12, 1, %v3359_v2 }
 0xa5c   : > { %3278 = vmatpush3.msra.mxu1 %v2053_v3  ;;  %v2415_v8 = vrot.slane %v2411_v4, %v3606_v1  ;;  %v4237_v11 = vrot.slane %v2411_v4, %v2418_v7 }
 0xa5d   : > { %3279 = vmatprep.subr.mxu1 %v3349_v0 }
 0xa5e   : > { %3280 = vmatpush3.msra.mxu1 %v4147_v6  ;;  %vm4239_vm13 = vcmp.eq.s32.totalorder %v2415_v8, 1  ;;  %v4243_v6 = vrot.slane %v2411_v4, %v2422_v9  ;;  %vm2425_vm5 = vcmp.eq.s32.totalorder %v4237_v11, 1 }
 0xa5f   : > { %3282 = vmatmul.mubr.msk.f32.vlgmr.msra.gmra.mxu1 %vm1551_vm11, %v665_v58 }
 0xa60   : > { %vm2426_vm0 = vcmp.eq.s32.totalorder %v4243_v6, 1  ;;  %3302 = vmatprep.mubr.msk.f32.mxu1 %vm1551_vm11, %v4315_v24 }
 0xb1a   : > { %v2336_v13 = vpop.f32.mrf.mxu0 }
 0xb1b   : > { %v2427_v2 = vsel %vm4239_vm13, %v2336_v13, 0.0 }
 0xb1c   : > { %2433 = vrot.lane.b32.xlu1 %v2427_v2, %s3368_s30  ;;  %v2338_v14 = vpop.f32.mrf.mxu0 }
 0xb1d   : > { %v2428_v63 = vsel %vm2425_vm5, %v2338_v14, 0.0 }
 0xb1e   : > { %2435 = vrot.lane.b32.xlu0 %v2428_v63, %s3368_s30 }
 0xb1f   : > { %v2407_v1 = vpop.f32.mrf.mxu1 }
 0xb20   : > { %v2429_v16 = vsel %vm2426_vm0, %v2407_v1, 0.0 }
 0xb21   : > { %2437 = vrot.lane.b32.xlu1 %v2429_v16, %s3368_s30  ;;  %v3283_v19 = vpop.f32.mrf.mxu1 }
 0xb8e   : > { %v2434_v20 = vpop.permute.xlu1 %2433 }
 0xb8f   : > { %2445 = vst.msk [vmem:[#allocation6] sm:$0xff] %vm2024_vm1, %v2434_v20 }
 0xb90   : > { %v2436_v21 = vpop.permute.xlu0 %2435 }
 0xb91   : > { %v4258_v22 = vsel %vm748_vm15, %v2434_v20, %v2436_v21 }
 0xb93   : > { %v2438_v23 = vpop.permute.xlu1 %2437 }
 0xb94   : > { %v4261_v15 = vsel %vm748_vm15, %v2436_v21, %v2438_v23  ;;  %2448 = vst.msk [vmem:[#allocation6 + $0x18] sm:$0xff] %vm748_vm15, %v2438_v23 }
 0xb96   : > { %v4264_v17 = vld [vmem:[#allocation6] sm:$0xff] }
 0xb97   : > { %2613 = vrot.lane.b32.xlu1 %v4264_v17, %s3369_s1 }
 0xb9b   : > { %2588 = vrot.lane.b32.xlu1 %v4264_v17, %s3371_s26  ;;  %v2633_v18 = vld [vmem:[#allocation6 + $0x18] sm:$0xff] }
 0xb9c   : > { %2644 = vrot.lane.b32.xlu0 %v2633_v18, %s3370_s20 }
 0xb9f   : > { %2563 = vrot.lane.b32.xlu1 %v4264_v17, %s3364_s21 }
 0xba0   : > { %2619 = vrot.lane.b32.xlu0 %v2633_v18, %s3369_s1 }
 0xba3   : > { %2538 = vrot.lane.b32.xlu1 %v4264_v17, %s3372_s22 }
 0xba4   : > { %2594 = vrot.lane.b32.xlu0 %v2633_v18, %s3371_s26 }
 0xba7   : > { %2513 = vrot.lane.b32.xlu1 %v4264_v17, %s3373_s23 }
 0xba8   : > { %2569 = vrot.lane.b32.xlu0 %v2633_v18, %s3364_s21 }
 0xbab   : > { %2488 = vrot.lane.b32.xlu1 %v4264_v17, %s3356_s25 }
 0xbac   : > { %2544 = vrot.lane.b32.xlu0 %v2633_v18, %s3372_s22 }
 0xbaf   : > { %2463 = vrot.lane.b32.xlu1 %v4264_v17, %s4417_s2 }
 0xbb0   : > { %2519 = vrot.lane.b32.xlu0 %v2633_v18, %s3373_s23 }
 0xbb3   : > { %2642 = vrot.lane.b32.xlu1 %v4261_v15, %s3370_s20 }
 0xbb4   : > { %2638 = vrot.lane.b32.xlu0 %v4264_v17, %s3370_s20 }
 0xbb7   : > { %2615 = vrot.lane.b32.xlu1 %v4258_v22, %s3369_s1 }
 0xbb8   : > { %2640 = vrot.lane.b32.xlu0 %v4258_v22, %s3370_s20 }
 0xbbb   : > { %2592 = vrot.lane.b32.xlu1 %v4261_v15, %s3371_s26 }
 0xbbc   : > { %2617 = vrot.lane.b32.xlu0 %v4261_v15, %s3369_s1 }
 0xbbf   : > { %2567 = vrot.lane.b32.xlu1 %v4261_v15, %s3364_s21 }
 0xbc0   : > { %2590 = vrot.lane.b32.xlu0 %v4258_v22, %s3371_s26 }
 0xbc3   : > { %2542 = vrot.lane.b32.xlu1 %v4261_v15, %s3372_s22 }
 0xbc4   : > { %2565 = vrot.lane.b32.xlu0 %v4258_v22, %s3364_s21  ;;  %s3306_s21 = smul.u32 48, %s4427_s28 }
 0xbc7   : > { %2517 = vrot.lane.b32.xlu1 %v4261_v15, %s3373_s23 }
 0xbc8   : > { %2540 = vrot.lane.b32.xlu0 %v4258_v22, %s3372_s22  ;;  %s644_s22 = scalar_lea.vmem %s4403_s16, %s3306_s21 }
 0xbcb   : > { %2492 = vrot.lane.b32.xlu1 %v4261_v15, %s3356_s25 }
 0xbcc   : > { %2515 = vrot.lane.b32.xlu0 %v4258_v22, %s3373_s23 }
 0xbcf   : > { %2467 = vrot.lane.b32.xlu1 %v4261_v15, %s4417_s2 }
 0xbd0   : > { %2490 = vrot.lane.b32.xlu0 %v4258_v22, %s3356_s25 }
 0xbd3   : > { %2469 = vrot.lane.b32.xlu1 %v2633_v18, %s4417_s2 }
 0xbd4   : > { %2465 = vrot.lane.b32.xlu0 %v4258_v22, %s4417_s2 }
 0xbd8   : > { %2494 = vrot.lane.b32.xlu0 %v2633_v18, %s3356_s25 }
 0xc09   : > { %v2614_v25 = vpop.permute.xlu1 %2613 }
 0xc0d   : > { %v2589_v26 = vpop.permute.xlu1 %2588 }
 0xc0e   : > { %v2645_v27 = vpop.permute.xlu0 %2644 }
 0xc11   : > { %v2564_v28 = vpop.permute.xlu1 %2563 }
 0xc12   : > { %v2620_v29 = vpop.permute.xlu0 %2619 }
 0xc15   : > { %v2539_v30 = vpop.permute.xlu1 %2538 }
 0xc16   : > { %v2595_v31 = vpop.permute.xlu0 %2594 }
 0xc19   : > { %v2514_v32 = vpop.permute.xlu1 %2513 }
 0xc1a   : > { %v2570_v5 = vpop.permute.xlu0 %2569 }
 0xc1d   : > { %v2489_v33 = vpop.permute.xlu1 %2488 }
 0xc1e   : > { %v2545_v34 = vpop.permute.xlu0 %2544 }
 0xc21   : > { %v4329_v35 = vpop.permute.xlu1 %2463 }
 0xc22   : > { %v2520_v36 = vpop.permute.xlu0 %2519 }
 0xc25   : > { %v2643_v37 = vpop.permute.xlu1 %2642 }
 0xc26   : > { %v2639_v10 = vpop.permute.xlu0 %2638  ;;  %v2648_v38 = vsel %vm2230_vm2, %v2643_v37, %v2645_v27 }
 0xc27   : > { %3284 = vmatprep.subr.mxu1 %v2648_v38 }
 0xc28   : > { %3285 = vmatpush3.msra.mxu1 %v2648_v38 }
 0xc29   : > { %v2616_v39 = vpop.permute.xlu1 %2615 }
 0xc2a   : > { %v2641_v40 = vpop.permute.xlu0 %2640  ;;  %v2621_v47 = vsel %vm2204_vm3, %v2614_v25, %v2616_v39  ;;  %v667_v25 = vld [vmem:[%s4395_s8 + $0x8] sm:$0x1] }
 0xc2b   : > { %v2646_v41 = vsel %vm2230_vm2, %v2639_v10, %v2641_v40  ;;  %v2647_v42 = vsel %vm2230_vm2, %v2641_v40, %v2643_v37 }
 0xc2c   : > { %2702 = vmatprep.subr.mxu0 %v2647_v42 }
 0xc2d   : > { %2703 = vmatpush1.msra.mxu0 %v2646_v41  ;;  %v2593_v43 = vpop.permute.xlu1 %2592 }
 0xc2e   : > { %v2618_v44 = vpop.permute.xlu0 %2617  ;;  %v2598_v49 = vsel %vm2178_vm4, %v2593_v43, %v2595_v31 }
 0xc2f   : > { %v2622_v45 = vsel %vm2204_vm3, %v2616_v39, %v2618_v44  ;;  %v2623_v46 = vsel %vm2204_vm3, %v2618_v44, %v2620_v29 }
 0xc30   : > { %2704 = vmatprep.subr.mxu0 %v2622_v45  ;;  %3286 = vmatprep.subr.mxu1 %v2623_v46 }
 0xc31   : > { %2705 = vmatpush1.msra.mxu0 %v2621_v47  ;;  %3287 = vmatpush3.msra.mxu1 %v2623_v46  ;;  %v2568_v48 = vpop.permute.xlu1 %2567 }
 0xc32   : > { %v2591_v50 = vpop.permute.xlu0 %2590  ;;  %3288 = vmatprep.subr.mxu1 %v2598_v49  ;;  %v2573_v51 = vsel %vm1514_vm6, %v2568_v48, %v2570_v5 }
 0xc33   : > { %v2596_v52 = vsel %vm2178_vm4, %v2589_v26, %v2591_v50  ;;  %3289 = vmatpush3.msra.mxu1 %v2598_v49  ;;  %v2597_v53 = vsel %vm2178_vm4, %v2591_v50, %v2593_v43 }
 0xc34   : > { %2706 = vmatprep.subr.mxu0 %v2597_v53  ;;  %3290 = vmatprep.subr.mxu1 %v2573_v51 }
 0xc35   : > { %2707 = vmatpush1.msra.mxu0 %v2596_v52  ;;  %3291 = vmatpush3.msra.mxu1 %v2573_v51  ;;  %v2543_v54 = vpop.permute.xlu1 %2542 }
 0xc36   : > { %v2566_v55 = vpop.permute.xlu0 %2565  ;;  %v2548_v56 = vsel %vm2127_vm7, %v2543_v54, %v2545_v34 }
 0xc37   : > { %v2571_v57 = vsel %vm1514_vm6, %v2564_v28, %v2566_v55  ;;  %3292 = vmatprep.subr.mxu1 %v2548_v56  ;;  %v2572_v58 = vsel %vm1514_vm6, %v2566_v55, %v2568_v48 }
 0xc38   : > { %2708 = vmatprep.subr.mxu0 %v2572_v58  ;;  %3293 = vmatpush3.msra.mxu1 %v2548_v56 }
 0xc39   : > { %2709 = vmatpush1.msra.mxu0 %v2571_v57  ;;  %v2518_v59 = vpop.permute.xlu1 %2517 }
 0xc3a   : > { %v2541_v60 = vpop.permute.xlu0 %2540  ;;  %v2523_v61 = vsel %vm2101_vm8, %v2518_v59, %v2520_v36 }
 0xc3b   : > { %v2546_v3 = vsel %vm2127_vm7, %v2539_v30, %v2541_v60  ;;  %3294 = vmatprep.subr.mxu1 %v2523_v61  ;;  %v2547_v62 = vsel %vm2127_vm7, %v2541_v60, %v2543_v54 }
 0xc3c   : > { %2710 = vmatprep.subr.mxu0 %v2547_v62  ;;  %3295 = vmatpush3.msra.mxu1 %v2523_v61 }
 0xc3d   : > { %2711 = vmatpush1.msra.mxu0 %v2546_v3  ;;  %v2493_v4 = vpop.permute.xlu1 %2492 }
 0xc3e   : > { %v2516_v7 = vpop.permute.xlu0 %2515 }
 0xc3f   : > { %v2521_v8 = vsel %vm2101_vm8, %v2514_v32, %v2516_v7  ;;  %v2522_v9 = vsel %vm2101_vm8, %v2516_v7, %v2518_v59 }
 0xc40   : > { %2712 = vmatprep.subr.mxu0 %v2522_v9 }
 0xc41   : > { %2713 = vmatpush1.msra.mxu0 %v2521_v8  ;;  %v2468_v63 = vpop.permute.xlu1 %2467 }
 0xc42   : > { %v2491_v13 = vpop.permute.xlu0 %2490 }
 0xc43   : > { %v2496_v2 = vsel %vm808_vm9, %v2489_v33, %v2491_v13  ;;  %v2497_v14 = vsel %vm808_vm9, %v2491_v13, %v2493_v4 }
 0xc44   : > { %2714 = vmatprep.subr.mxu0 %v2497_v14 }
 0xc45   : > { %2715 = vmatpush1.msra.mxu0 %v2496_v2  ;;  %v2470_v20 = vpop.permute.xlu1 %2469 }
 0xc46   : > { %v2466_v1 = vpop.permute.xlu0 %2465  ;;  %v2473_v18 = vsel %vm785_vm10, %v2468_v63, %v2470_v20 }
 0xc47   : > { %v2471_v16 = vsel %vm785_vm10, %v4329_v35, %v2466_v1  ;;  %v2472_v19 = vsel %vm785_vm10, %v2466_v1, %v2468_v63 }
 0xc48   : > { %2716 = vmatprep.subr.mxu0 %v2472_v19 }
 0xc49   : > { %2717 = vmatpush1.msra.mxu0 %v2471_v16 }
 0xc4a   : > { %v2495_v21 = vpop.permute.xlu0 %2494  ;;  %2718 = vmatprep.subr.mxu0 %v4258_v22 }
 0xc4b   : > { %2719 = vmatpush1.msra.mxu0 %v4264_v17  ;;  %v2498_v23 = vsel %vm808_vm9, %v2493_v4, %v2495_v21 }
 0xc4c   : > { %3069 = vmatmul.mubr.msk.f32.vlgmr.msra.gmra.mxu0 %vm1551_vm11, %v4315_v24  ;;  %3296 = vmatprep.subr.mxu1 %v2498_v23 }
 0xc4d   : > { %3297 = vmatpush3.msra.mxu1 %v2498_v23  ;;  %2758 = vmatprep.mubr.f32.mxu0 %v3349_v0 }
 0xc4e   : > { %3298 = vmatprep.subr.mxu1 %v2473_v18 }
 0xc4f   : > { %3299 = vmatpush3.msra.mxu1 %v2473_v18 }
 0xc50   : > { %3070 = vmatmul.mubr.msk.f32.gmra.mxu0 %vm1551_vm11, %v667_v25  ;;  %3300 = vmatprep.subr.mxu1 %v4261_v15 }
 0xc51   : > { %3301 = vmatpush3.msra.mxu1 %v4261_v15 }
 0xc52   : > { %3303 = vmatmul.mubr.msk.f32.vlgmr.msra.gmra.mxu1 %vm1551_vm11, %v667_v25 }
 0xd0c   : > { %v2754_v0 = vpop.f32.mrf.mxu0 }
 0xd0d   : > { %v2840_v22 = vsel %vm4239_vm13, %v2754_v0, 0.0 }
 0xd0e   : > { %2846 = vst [vmem:[%s644_s22] sm:$0xff] %v2840_v22  ;;  %v2756_v17 = vpop.f32.mrf.mxu0 }
 0xd0f   : > { %v2841_v24 = vsel %vm2425_vm5, %v2756_v17, 0.0 }
 0xd10   : > { %2847 = vst [vmem:[%s644_s22 + $0x8] sm:$0xff] %v2841_v24  ;;  %v2760_v26 = vpop.f32.mrf.mxu0 }
 0xd11   : > { %v2843_v15 = vsel %vm4239_vm13, %v2760_v26, 0.0 }
 0xd12   : > { %2849 = vst [vmem:[%s644_s22 + $0x18] sm:$0x1] %v2843_v15  ;;  %v2762_v27 = vpop.f32.mrf.mxu0  ;;  %v3304_v28 = vpop.f32.mrf.mxu1 }
 0xd13   : > { %v2844_v29 = vsel %vm2425_vm5, %v2762_v27, 0.0  ;;  %v2845_v30 = vsel %vm2426_vm0, %v3304_v28, 0.0 }
 0xd14   : > { %2850 = vst [vmem:[%s644_s22 + $0x20] sm:$0x1] %v2844_v29  ;;  %2851 = vst [vmem:[%s644_s22 + $0x28] sm:$0x1] %v2845_v30  ;;  %v2831_v31 = vpop.f32.mrf.mxu1 }
 0xd15   : > { %v2842_v32 = vsel %vm2426_vm0, %v2831_v31, 0.0 }
 0xd16   : > { %2848 = vst [vmem:[%s644_s22 + $0x10] sm:$0xff] %v2842_v32 }
 0xd17 PF: > { %s29_s27 = sadd.s32 1, %s3347_s27  }
 0xd18   : > { %p26_p4 = scmp.ge.s32.totalorder %s29_s27, 4  }
 0xd1a   :  { %28 = sbr.rel (!%p26_p4) target bundleno = 4 (0x4), region = 160 }

</bundles_post_ra>
